<compile_context>
chip_gen: v7x
topology: tpu7x:2x2x1
jax: 0.10.0
libtpu: 0.0.40
codegen_flags: <defaults>
</compile_context>

<pallas_src>
import functools

import jax
import jax.numpy as jnp
from jax.experimental import pallas as pl
from jax.experimental.pallas import tpu as pltpu


# ---------------------------------------------------------------------------
# small padding helpers
# ---------------------------------------------------------------------------
def _round_up(x, m):
    return ((x + m - 1) // m) * m


def _pad128(d):
    return _round_up(d, 128)


def _pad_mat(w, rows, cols):
    return jnp.zeros((rows, cols), jnp.float32).at[: w.shape[0], : w.shape[1]].set(w)


def _pad_bias(b, cols):
    return jnp.zeros((1, cols), jnp.float32).at[0, : b.shape[0]].set(b)


def _pad_segmented_w(w, seg_sizes, seg_pads, out_pad):
    """Pad a first-layer weight whose rows correspond to a concat of segments."""
    parts, off = [], 0
    for s, sp in zip(seg_sizes, seg_pads):
        parts.append(_pad_mat(w[off : off + s], sp, out_pad))
        off += s
    return jnp.concatenate(parts, axis=0)


# ---------------------------------------------------------------------------
# Pallas kernel: one full GraphLayer, grid = (num_edge_tiles,)
# ---------------------------------------------------------------------------
def gnn_layer_kernel(
    nh_ref, eh_ref, src_col_ref, dst_col_ref, dst_row_ref,
    ew0_ref, eb0_ref, ew1_ref, eb1_ref, ew2_ref, eb2_ref, ew3_ref, eb3_ref,
    nw0_ref, nb0_ref, nw1_ref, nb1_ref, nw2_ref, nb2_ref, nw3_ref, nb3_ref,
    out_nh_ref, out_eh_ref, agg_ref,
    *, compute_dtype,
):
    f32 = jnp.float32
    t = pl.program_id(0)

    @pl.when(t == 0)
    def _init():
        agg_ref[...] = jnp.zeros_like(agg_ref)

    def cast(x):
        return x.astype(compute_dtype)

    nh = nh_ref[...]                                   # (N_pad, Dn_pad) resident node table
    n_pad = nh.shape[0]
    e_tile = eh_ref.shape[0]

    # ---- build per-tile selection one-hots from int32 indices (no (E,N) HBM traffic) ----
    src_idx = src_col_ref[...]                         # (e_tile, 1) int32, -1 for padded edges
    dst_idx = dst_col_ref[...]                         # (e_tile, 1) int32
    col_iota = jax.lax.broadcasted_iota(jnp.int32, (e_tile, n_pad), 1)
    src_oh = (col_iota == src_idx).astype(compute_dtype)   # (e_tile, n_pad)
    dst_oh = (col_iota == dst_idx).astype(compute_dtype)

    # ---- gather endpoint node features on the MXU ----
    nh_c = cast(nh)
    h_src = jnp.dot(src_oh, nh_c, preferred_element_type=f32)
    h_dst = jnp.dot(dst_oh, nh_c, preferred_element_type=f32)

    # ---- edge MLP: single merged layer-0 matmul over concat([h_src, h_dst, e]) ----
    eh = eh_ref[...]
    x = jnp.dot(cast(jnp.concatenate([h_src, h_dst, eh], axis=-1)), ew0_ref[...],
                preferred_element_type=f32) + eb0_ref[...]
    x = jnp.maximum(x, 0.0)
    x = jnp.maximum(jnp.dot(cast(x), ew1_ref[...], preferred_element_type=f32) + eb1_ref[...], 0.0)
    x = jnp.maximum(jnp.dot(cast(x), ew2_ref[...], preferred_element_type=f32) + eb2_ref[...], 0.0)
    e_new = jnp.maximum(jnp.dot(cast(x), ew3_ref[...], preferred_element_type=f32) + eb3_ref[...], 0.0)
    out_eh_ref[...] = e_new.astype(out_eh_ref.dtype)

    # ---- scatter-sum into the per-node VMEM accumulator (copy_e + sum) ----
    dst_row = dst_row_ref[...]                          # (1, e_tile) int32
    row_iota = jax.lax.broadcasted_iota(jnp.int32, (n_pad, e_tile), 0)
    scat_oh = (row_iota == dst_row).astype(compute_dtype)   # (n_pad, e_tile)
    agg_ref[...] += jnp.dot(scat_oh, cast(e_new), preferred_element_type=f32)

    # ---- node MLP: run once, after all edge tiles have been aggregated ----
    @pl.when(t == pl.num_programs(0) - 1)
    def _finalize():
        y = jnp.dot(cast(jnp.concatenate([agg_ref[...], nh], axis=-1)), nw0_ref[...],
                    preferred_element_type=f32) + nb0_ref[...]
        y = jnp.maximum(y, 0.0)
        y = jnp.maximum(jnp.dot(cast(y), nw1_ref[...], preferred_element_type=f32) + nb1_ref[...], 0.0)
        y = jnp.maximum(jnp.dot(cast(y), nw2_ref[...], preferred_element_type=f32) + nb2_ref[...], 0.0)
        y = jnp.maximum(jnp.dot(cast(y), nw3_ref[...], preferred_element_type=f32) + nb3_ref[...], 0.0)
        out_nh_ref[...] = y.astype(out_nh_ref.dtype)


def _gnn_layer_pallas(nh_p, eh_p, src_col, dst_col, dst_row,
                      edge_params, node_params, n_pad, e_tile, dims, compute_dtype):
    e_pad = eh_p.shape[0]
    grid = (e_pad // e_tile,)
    eo_p, no_p = dims["eo_p"], dims["no_p"]

    def resident(x):
        return pl.BlockSpec(x.shape, lambda i: (0, 0))

    in_specs = [
        resident(nh_p),                                              # node table: resident
        pl.BlockSpec((e_tile, eh_p.shape[1]), lambda i: (i, 0)),     # edge features: streamed
        pl.BlockSpec((e_tile, 1), lambda i: (i, 0)),                 # src indices (column)
        pl.BlockSpec((e_tile, 1), lambda i: (i, 0)),                 # dst indices (column)
        pl.BlockSpec((1, e_tile), lambda i: (0, i)),                 # dst indices (row)
    ]
    weight_inputs = list(edge_params) + list(node_params)
    in_specs += [resident(w) for w in weight_inputs]                 # weights/biases: resident

    out_specs = (
        pl.BlockSpec((n_pad, no_p), lambda i: (0, 0)),               # node output: resident, final write
        pl.BlockSpec((e_tile, eo_p), lambda i: (i, 0)),              # edge output: streamed
    )
    out_shape = (
        jax.ShapeDtypeStruct((n_pad, no_p), jnp.float32),
        jax.ShapeDtypeStruct((e_pad, eo_p), jnp.float32),
    )

    kernel = functools.partial(gnn_layer_kernel, compute_dtype=compute_dtype)
    out_nh, out_eh = pl.pallas_call(
        kernel,
        out_shape=out_shape,
        grid_spec=pltpu.PrefetchScalarGridSpec(
            num_scalar_prefetch=0,
            grid=grid,
            in_specs=in_specs,
            out_specs=out_specs,
            scratch_shapes=[pltpu.VMEM((n_pad, eo_p), jnp.float32)],  # per-node aggregation acc
        ),
        compiler_params=pltpu.CompilerParams(
            dimension_semantics=("arbitrary",),            # edge axis is a reduction into agg
            vmem_limit_bytes=32 * 1024 * 1024,             # explicit budget, safe on v5e/v6e/v7x
        ),
    )(nh_p, eh_p, src_col, dst_col, dst_row, *weight_inputs)
    return out_nh, out_eh


# ---------------------------------------------------------------------------
# parameter construction (mirrors GraphNeuralNetwork.__init__) + padding
# ---------------------------------------------------------------------------
def make_linear(key, in_dim, out_dim):
    kw, kb = jax.random.split(key)
    w = 0.1 * jax.random.normal(kw, (in_dim, out_dim), dtype=jnp.float32)
    b = 0.1 * jax.random.normal(kb, (out_dim,), dtype=jnp.float32)
    return w, b


def make_mlp(key, input_dim, output_dim, hidden_dim):
    in_dims = [input_dim] + hidden_dim
    out_dims = hidden_dim + [output_dim]
    keys = jax.random.split(key, len(in_dims))
    return [make_linear(k, i, o) for k, i, o in zip(keys, in_dims, out_dims)]


def make_gnn_params(key, num_layer, node_input_dim, node_output_dim,
                    edge_input_dim, edge_output_dim,
                    node_hidden_dim=64, edge_hidden_dim=64):
    node_in_dims = [node_input_dim] + [node_hidden_dim] * (num_layer - 1)
    node_out_dims = [node_hidden_dim] * (num_layer - 1) + [node_output_dim]
    edge_in_dims = [edge_input_dim] + [edge_hidden_dim] * (num_layer - 1)
    edge_out_dims = [edge_hidden_dim] * (num_layer - 1) + [edge_output_dim]

    layers = []
    keys = jax.random.split(key, num_layer)
    for k, n_in, n_out, e_in, e_out in zip(keys, node_in_dims, node_out_dims,
                                           edge_in_dims, edge_out_dims):
        ke, kn = jax.random.split(k)
        edge_model = make_mlp(ke, 2 * n_in + e_in, e_out, hidden_dim=[64, 64, 64])
        node_model = make_mlp(kn, n_in + e_out, n_out, hidden_dim=[64, 64, 64])
        layers.append(dict(edge=edge_model, node=node_model, node_in=n_in))
    return layers


def _pad_layer_params(layer, compute_dtype):
    (ew0, eb0), (ew1, eb1), (ew2, eb2), (ew3, eb3) = layer["edge"]
    (nw0, nb0), (nw1, nb1), (nw2, nb2), (nw3, nb3) = layer["node"]
    n_in = layer["node_in"]
    e_in = ew0.shape[0] - 2 * n_in
    e_out = ew3.shape[1]

    dn_p, de_p = _pad128(n_in), _pad128(e_in)
    h_p = _pad128(ew1.shape[0])
    eo_p = _pad128(e_out)
    no_p = _pad128(nw3.shape[1])
    cd = compute_dtype

    edge_p = (
        _pad_segmented_w(ew0, (n_in, n_in, e_in), (dn_p, dn_p, de_p), h_p).astype(cd),
        _pad_bias(eb0, h_p),
        _pad_mat(ew1, h_p, h_p).astype(cd), _pad_bias(eb1, h_p),
        _pad_mat(ew2, h_p, h_p).astype(cd), _pad_bias(eb2, h_p),
        _pad_mat(ew3, h_p, eo_p).astype(cd), _pad_bias(eb3, eo_p),
    )
    node_p = (
        _pad_segmented_w(nw0, (e_out, n_in), (eo_p, dn_p), h_p).astype(cd),
        _pad_bias(nb0, h_p),
        _pad_mat(nw1, h_p, h_p).astype(cd), _pad_bias(nb1, h_p),
        _pad_mat(nw2, h_p, h_p).astype(cd), _pad_bias(nb2, h_p),
        _pad_mat(nw3, h_p, no_p).astype(cd), _pad_bias(nb3, no_p),
    )
    return edge_p, node_p, dict(eo_p=eo_p, no_p=no_p)


# ---------------------------------------------------------------------------
# forward pass: pad once, chain padded activations across layers, slice at the end
# ---------------------------------------------------------------------------
def gnn_forward_pallas(node_h, edge_h, src, dst, layers,
                       *, edge_tile=512, compute_dtype=jnp.float32):
    N, dn = node_h.shape
    E, de = edge_h.shape

    n_pad = _round_up(N, 8)
    e_pad = _round_up(E, 128)
    e_tile = min(_round_up(edge_tile, 128), e_pad)
    e_pad = _round_up(E, e_tile)                  # multiple of the tile size

    nh_p = _pad_mat(node_h, n_pad, _pad128(dn))
    eh_p = _pad_mat(edge_h, e_pad, _pad128(de))

    pad_idx = -jnp.ones((e_pad - E,), jnp.int32)  # padded edges select / scatter nothing
    src_p = jnp.concatenate([src.astype(jnp.int32), pad_idx])
    dst_p = jnp.concatenate([dst.astype(jnp.int32), pad_idx])
    src_col = src_p.reshape(e_pad, 1)
    dst_col = dst_p.reshape(e_pad, 1)
    dst_row = dst_p.reshape(1, e_pad)

    for layer in layers:
        edge_p, node_p, dims = _pad_layer_params(layer, compute_dtype)
        nh_p, eh_p = _gnn_layer_pallas(nh_p, eh_p, src_col, dst_col, dst_row,
                                       edge_p, node_p, n_pad, e_tile, dims, compute_dtype)

    node_out_dim = layers[-1]["node"][-1][0].shape[1]
    edge_out_dim = layers[-1]["edge"][-1][0].shape[1]
    return nh_p[:N, :node_out_dim], eh_p[:E, :edge_out_dim]


# ---------------------------------------------------------------------------
# pure-JAX reference (mirrors the PyTorch/DGL semantics directly)
# ---------------------------------------------------------------------------
def mlp_ref(x, params):
    for w, b in params:
        x = jnp.maximum(jnp.dot(x, w) + b, 0.0)   # Linear followed by ReLU (every layer)
    return x


def gnn_forward_ref(node_h, edge_h, src, dst, layers):
    N = node_h.shape[0]
    for layer in layers:
        edge_in = jnp.concatenate([node_h[src], node_h[dst], edge_h], axis=-1)
        edge_h = mlp_ref(edge_in, layer["edge"])
        agg = jnp.zeros((N, edge_h.shape[-1]), jnp.float32).at[dst].add(edge_h)
        node_in = jnp.concatenate([agg, node_h], axis=-1)
        node_h = mlp_ref(node_in, layer["node"])
    return node_h, edge_h


# ---------------------------------------------------------------------------
if __name__ == "__main__":
    key = jax.random.PRNGKey(0)
    k_graph, k_nh, k_eh, k_params = jax.random.split(key, 4)

    # small synthetic graph
    N = 8            # nodes
    E = 16           # edges
    num_layer = 2
    node_input_dim, node_output_dim = 8, 4
    edge_input_dim, edge_output_dim = 8, 4

    k_src, k_dst = jax.random.split(k_graph)
    src = jax.random.randint(k_src, (E,), 0, N)
    dst = jax.random.randint(k_dst, (E,), 0, N)

    node_h = jax.random.normal(k_nh, (N, node_input_dim), dtype=jnp.float32)
    edge_h = jax.random.normal(k_eh, (E, edge_input_dim), dtype=jnp.float32)

    layers = make_gnn_params(k_params, num_layer,
                             node_input_dim, node_output_dim,
                             edge_input_dim, edge_output_dim)

    out_nh, out_eh = gnn_forward_pallas(node_h, edge_h, src, dst, layers,
                                        edge_tile=512, compute_dtype=jnp.float32)
    out_nh = jax.block_until_ready(out_nh)
    out_eh = jax.block_until_ready(out_eh)

    ref_nh, ref_eh = gnn_forward_ref(node_h, edge_h, src, dst, layers)
    assert out_nh.shape == (N, node_output_dim)
    assert out_eh.shape == (E, edge_output_dim)
    assert jnp.allclose(out_nh, ref_nh, atol=1e-4, rtol=1e-4)
    assert jnp.allclose(out_eh, ref_eh, atol=1e-4, rtol=1e-4)

    print("KERNEL_OK")
</pallas_src>

<mosaic_0001>
module attributes {stable_mosaic.version = 11 : i64} {
  func.func @gnn_layer_kernel(%arg0: i32, %arg1: memref<8x128xf32, #tpu.memory_space<vmem>>, %arg2: memref<128x128xf32, #tpu.memory_space<vmem>>, %arg3: memref<128x1xi32, #tpu.memory_space<vmem>>, %arg4: memref<128x1xi32, #tpu.memory_space<vmem>>, %arg5: memref<1x128xi32, #tpu.memory_space<vmem>>, %arg6: memref<384x128xf32, #tpu.memory_space<vmem>>, %arg7: memref<1x128xf32, #tpu.memory_space<vmem>>, %arg8: memref<128x128xf32, #tpu.memory_space<vmem>>, %arg9: memref<1x128xf32, #tpu.memory_space<vmem>>, %arg10: memref<128x128xf32, #tpu.memory_space<vmem>>, %arg11: memref<1x128xf32, #tpu.memory_space<vmem>>, %arg12: memref<128x128xf32, #tpu.memory_space<vmem>>, %arg13: memref<1x128xf32, #tpu.memory_space<vmem>>, %arg14: memref<256x128xf32, #tpu.memory_space<vmem>>, %arg15: memref<1x128xf32, #tpu.memory_space<vmem>>, %arg16: memref<128x128xf32, #tpu.memory_space<vmem>>, %arg17: memref<1x128xf32, #tpu.memory_space<vmem>>, %arg18: memref<128x128xf32, #tpu.memory_space<vmem>>, %arg19: memref<1x128xf32, #tpu.memory_space<vmem>>, %arg20: memref<128x128xf32, #tpu.memory_space<vmem>>, %arg21: memref<1x128xf32, #tpu.memory_space<vmem>>, %arg22: memref<8x128xf32, #tpu.memory_space<vmem>>, %arg23: memref<128x128xf32, #tpu.memory_space<vmem>>, %arg24: memref<8x128xf32, #tpu.memory_space<vmem>>) attributes {dimension_semantics = [#tpu.dimension_semantics<arbitrary>], iteration_bounds = array<i64: 1>, scalar_prefetch = 0 : i64, scratch_operands = 1 : i64, tpu.core_type = #tpu.core_type<tc>, window_params = [{pipeline_mode = #tpu.pipeline_mode<synchronous>, transform_indices = @transform_0, window_bounds = array<i64: 8, 128>}, {transform_indices = @transform_1, window_bounds = array<i64: 128, 128>}, {transform_indices = @transform_2, window_bounds = array<i64: 128, 1>}, {transform_indices = @transform_3, window_bounds = array<i64: 128, 1>}, {transform_indices = @transform_4, window_bounds = array<i64: 1, 128>}, {pipeline_mode = #tpu.pipeline_mode<synchronous>, transform_indices = @transform_5, window_bounds = array<i64: 384, 128>}, {pipeline_mode = #tpu.pipeline_mode<synchronous>, transform_indices = @transform_6, window_bounds = array<i64: 1, 128>}, {pipeline_mode = #tpu.pipeline_mode<synchronous>, transform_indices = @transform_7, window_bounds = array<i64: 128, 128>}, {pipeline_mode = #tpu.pipeline_mode<synchronous>, transform_indices = @transform_8, window_bounds = array<i64: 1, 128>}, {pipeline_mode = #tpu.pipeline_mode<synchronous>, transform_indices = @transform_9, window_bounds = array<i64: 128, 128>}, {pipeline_mode = #tpu.pipeline_mode<synchronous>, transform_indices = @transform_10, window_bounds = array<i64: 1, 128>}, {pipeline_mode = #tpu.pipeline_mode<synchronous>, transform_indices = @transform_11, window_bounds = array<i64: 128, 128>}, {pipeline_mode = #tpu.pipeline_mode<synchronous>, transform_indices = @transform_12, window_bounds = array<i64: 1, 128>}, {pipeline_mode = #tpu.pipeline_mode<synchronous>, transform_indices = @transform_13, window_bounds = array<i64: 256, 128>}, {pipeline_mode = #tpu.pipeline_mode<synchronous>, transform_indices = @transform_14, window_bounds = array<i64: 1, 128>}, {pipeline_mode = #tpu.pipeline_mode<synchronous>, transform_indices = @transform_15, window_bounds = array<i64: 128, 128>}, {pipeline_mode = #tpu.pipeline_mode<synchronous>, transform_indices = @transform_16, window_bounds = array<i64: 1, 128>}, {pipeline_mode = #tpu.pipeline_mode<synchronous>, transform_indices = @transform_17, window_bounds = array<i64: 128, 128>}, {pipeline_mode = #tpu.pipeline_mode<synchronous>, transform_indices = @transform_18, window_bounds = array<i64: 1, 128>}, {pipeline_mode = #tpu.pipeline_mode<synchronous>, transform_indices = @transform_19, window_bounds = array<i64: 128, 128>}, {pipeline_mode = #tpu.pipeline_mode<synchronous>, transform_indices = @transform_20, window_bounds = array<i64: 1, 128>}, {pipeline_mode = #tpu.pipeline_mode<synchronous>, transform_indices = @transform_21, window_bounds = array<i64: 8, 128>}, {transform_indices = @transform_22, window_bounds = array<i64: 128, 128>}]} {
    %c0_i32 = arith.constant 0 : i32
    %0 = arith.cmpi eq, %arg0, %c0_i32 : i32
    %1 = arith.extui %0 : i1 to i32
    %c0_i32_0 = arith.constant 0 : i32
    %2 = arith.cmpi ne, %1, %c0_i32_0 : i32
    scf.if %2 {
      %cst_44 = arith.constant 0.000000e+00 : f32
      %61 = vector.broadcast %cst_44 : f32 to vector<8x128xf32>
      %c0_45 = arith.constant 0 : index
      %c0_46 = arith.constant 0 : index
      %62 = vector.load %arg24[%c0_45, %c0_46] : memref<8x128xf32, #tpu.memory_space<vmem>>, vector<8x128xf32>
      tpu.vector_store %arg24[%c0_45, %c0_46], %61 {strides = array<i32>} : memref<8x128xf32, #tpu.memory_space<vmem>>, vector<8x128xf32>,
    } else {
    }
    %c0 = arith.constant 0 : index
    %c0_1 = arith.constant 0 : index
    %3 = vector.load %arg1[%c0, %c0_1] : memref<8x128xf32, #tpu.memory_space<vmem>>, vector<8x128xf32>
    %c0_2 = arith.constant 0 : index
    %c0_3 = arith.constant 0 : index
    %4 = vector.load %arg3[%c0_2, %c0_3] : memref<128x1xi32, #tpu.memory_space<vmem>>, vector<128x1xi32>
    %c0_4 = arith.constant 0 : index
    %c0_5 = arith.constant 0 : index
    %5 = vector.load %arg4[%c0_4, %c0_5] : memref<128x1xi32, #tpu.memory_space<vmem>>, vector<128x1xi32>
    %6 = tpu.iota {dimensions = array<i32: 1>} : vector<128x8xi32>
    %7 = vector.broadcast %4 : vector<128x1xi32> to vector<128x8xi32>
    %8 = arith.cmpi eq, %6, %7 : vector<128x8xi32>
    %9 = arith.extui %8 : vector<128x8xi1> to vector<128x8xi32>
    %10 = arith.sitofp %9 : vector<128x8xi32> to vector<128x8xf32>
    %11 = vector.broadcast %5 : vector<128x1xi32> to vector<128x8xi32>
    %12 = arith.cmpi eq, %6, %11 : vector<128x8xi32>
    %13 = arith.extui %12 : vector<128x8xi1> to vector<128x8xi32>
    %14 = arith.sitofp %13 : vector<128x8xi32> to vector<128x8xf32>
    %cst = arith.constant dense<0.000000e+00> : vector<128x128xf32>
    %15 = tpu.matmul %10, %3, %cst {dimension_numbers = #tpu.dot_dimension_numbers<[1], [0], [0], [1], [0, 0, 1, 1], [], []>} : vector<128x8xf32>, vector<8x128xf32>, vector<128x128xf32> -> vector<128x128xf32>
    %cst_6 = arith.constant dense<0.000000e+00> : vector<128x128xf32>
    %16 = tpu.matmul %14, %3, %cst_6 {dimension_numbers = #tpu.dot_dimension_numbers<[1], [0], [0], [1], [0, 0, 1, 1], [], []>} : vector<128x8xf32>, vector<8x128xf32>, vector<128x128xf32> -> vector<128x128xf32>
    %c0_7 = arith.constant 0 : index
    %c0_8 = arith.constant 0 : index
    %17 = vector.load %arg2[%c0_7, %c0_8] : memref<128x128xf32, #tpu.memory_space<vmem>>, vector<128x128xf32>
    %18 = tpu.concatenate %15, %16, %17 in 1 : vector<128x128xf32>, vector<128x128xf32>, vector<128x128xf32> -> vector<128x384xf32>
    %c0_9 = arith.constant 0 : index
    %c0_10 = arith.constant 0 : index
    %19 = vector.load %arg6[%c0_9, %c0_10] : memref<384x128xf32, #tpu.memory_space<vmem>>, vector<384x128xf32>
    %cst_11 = arith.constant dense<0.000000e+00> : vector<128x128xf32>
    %20 = tpu.matmul %18, %19, %cst_11 {dimension_numbers = #tpu.dot_dimension_numbers<[1], [0], [0], [1], [0, 0, 1, 1], [], []>} : vector<128x384xf32>, vector<384x128xf32>, vector<128x128xf32> -> vector<128x128xf32>
    %c0_12 = arith.constant 0 : index
    %c0_13 = arith.constant 0 : index
    %21 = vector.load %arg7[%c0_12, %c0_13] : memref<1x128xf32, #tpu.memory_space<vmem>>, vector<1x128xf32>
    %22 = vector.broadcast %21 : vector<1x128xf32> to vector<128x128xf32>
    %23 = arith.addf %20, %22 : vector<128x128xf32>
    %cst_14 = arith.constant 0.000000e+00 : f32
    %24 = vector.broadcast %cst_14 : f32 to vector<128x128xf32>
    %25 = arith.maximumf %23, %24 : vector<128x128xf32>
    %c0_15 = arith.constant 0 : index
    %c0_16 = arith.constant 0 : index
    %26 = vector.load %arg8[%c0_15, %c0_16] : memref<128x128xf32, #tpu.memory_space<vmem>>, vector<128x128xf32>
    %cst_17 = arith.constant dense<0.000000e+00> : vector<128x128xf32>
    %27 = tpu.matmul %25, %26, %cst_17 {dimension_numbers = #tpu.dot_dimension_numbers<[1], [0], [0], [1], [0, 0, 1, 1], [], []>} : vector<128x128xf32>, vector<128x128xf32>, vector<128x128xf32> -> vector<128x128xf32>
    %c0_18 = arith.constant 0 : index
    %c0_19 = arith.constant 0 : index
    %28 = vector.load %arg9[%c0_18, %c0_19] : memref<1x128xf32, #tpu.memory_space<vmem>>, vector<1x128xf32>
    %29 = vector.broadcast %28 : vector<1x128xf32> to vector<128x128xf32>
    %30 = arith.addf %27, %29 : vector<128x128xf32>
    %cst_20 = arith.constant 0.000000e+00 : f32
    %31 = vector.broadcast %cst_20 : f32 to vector<128x128xf32>
    %32 = arith.maximumf %30, %31 : vector<128x128xf32>
    %c0_21 = arith.constant 0 : index
    %c0_22 = arith.constant 0 : index
    %33 = vector.load %arg10[%c0_21, %c0_22] : memref<128x128xf32, #tpu.memory_space<vmem>>, vector<128x128xf32>
    %cst_23 = arith.constant dense<0.000000e+00> : vector<128x128xf32>
    %34 = tpu.matmul %32, %33, %cst_23 {dimension_numbers = #tpu.dot_dimension_numbers<[1], [0], [0], [1], [0, 0, 1, 1], [], []>} : vector<128x128xf32>, vector<128x128xf32>, vector<128x128xf32> -> vector<128x128xf32>
    %c0_24 = arith.constant 0 : index
    %c0_25 = arith.constant 0 : index
    %35 = vector.load %arg11[%c0_24, %c0_25] : memref<1x128xf32, #tpu.memory_space<vmem>>, vector<1x128xf32>
    %36 = vector.broadcast %35 : vector<1x128xf32> to vector<128x128xf32>
    %37 = arith.addf %34, %36 : vector<128x128xf32>
    %cst_26 = arith.constant 0.000000e+00 : f32
    %38 = vector.broadcast %cst_26 : f32 to vector<128x128xf32>
    %39 = arith.maximumf %37, %38 : vector<128x128xf32>
    %c0_27 = arith.constant 0 : index
    %c0_28 = arith.constant 0 : index
    %40 = vector.load %arg12[%c0_27, %c0_28] : memref<128x128xf32, #tpu.memory_space<vmem>>, vector<128x128xf32>
    %cst_29 = arith.constant dense<0.000000e+00> : vector<128x128xf32>
    %41 = tpu.matmul %39, %40, %cst_29 {dimension_numbers = #tpu.dot_dimension_numbers<[1], [0], [0], [1], [0, 0, 1, 1], [], []>} : vector<128x128xf32>, vector<128x128xf32>, vector<128x128xf32> -> vector<128x128xf32>
    %c0_30 = arith.constant 0 : index
    %c0_31 = arith.constant 0 : index
    %42 = vector.load %arg13[%c0_30, %c0_31] : memref<1x128xf32, #tpu.memory_space<vmem>>, vector<1x128xf32>
    %43 = vector.broadcast %42 : vector<1x128xf32> to vector<128x128xf32>
    %44 = arith.addf %41, %43 : vector<128x128xf32>
    %cst_32 = arith.constant 0.000000e+00 : f32
    %45 = vector.broadcast %cst_32 : f32 to vector<128x128xf32>
    %46 = arith.maximumf %44, %45 : vector<128x128xf32>
    %c0_33 = arith.constant 0 : index
    %c0_34 = arith.constant 0 : index
    %47 = vector.load %arg23[%c0_33, %c0_34] : memref<128x128xf32, #tpu.memory_space<vmem>>, vector<128x128xf32>
    tpu.vector_store %arg23[%c0_33, %c0_34], %46 {strides = array<i32>} : memref<128x128xf32, #tpu.memory_space<vmem>>, vector<128x128xf32>,
    %c0_35 = arith.constant 0 : index
    %c0_36 = arith.constant 0 : index
    %48 = vector.load %arg5[%c0_35, %c0_36] : memref<1x128xi32, #tpu.memory_space<vmem>>, vector<1x128xi32>
    %49 = tpu.iota {dimensions = array<i32: 0>} : vector<8x128xi32>
    %50 = vector.broadcast %48 : vector<1x128xi32> to vector<8x128xi32>
    %51 = arith.cmpi eq, %49, %50 : vector<8x128xi32>
    %52 = arith.extui %51 : vector<8x128xi1> to vector<8x128xi32>
    %53 = arith.sitofp %52 : vector<8x128xi32> to vector<8x128xf32>
    %c0_37 = arith.constant 0 : index
    %c0_38 = arith.constant 0 : index
    %54 = vector.load %arg24[%c0_37, %c0_38] : memref<8x128xf32, #tpu.memory_space<vmem>>, vector<8x128xf32>
    %cst_39 = arith.constant dense<0.000000e+00> : vector<8x128xf32>
    %55 = tpu.matmul %53, %46, %cst_39 {dimension_numbers = #tpu.dot_dimension_numbers<[1], [0], [0], [1], [0, 0, 1, 1], [], []>} : vector<8x128xf32>, vector<128x128xf32>, vector<8x128xf32> -> vector<8x128xf32>
    %56 = arith.addf %54, %55 : vector<8x128xf32>
    %c0_40 = arith.constant 0 : index
    %c0_41 = arith.constant 0 : index
    %57 = vector.load %arg24[%c0_40, %c0_41] : memref<8x128xf32, #tpu.memory_space<vmem>>, vector<8x128xf32>
    tpu.vector_store %arg24[%c0_40, %c0_41], %56 {strides = array<i32>} : memref<8x128xf32, #tpu.memory_space<vmem>>, vector<8x128xf32>,
    %c0_i32_42 = arith.constant 0 : i32
    %58 = arith.cmpi eq, %arg0, %c0_i32_42 : i32
    %59 = arith.extui %58 : i1 to i32
    %c0_i32_43 = arith.constant 0 : i32
    %60 = arith.cmpi ne, %59, %c0_i32_43 : i32
    scf.if %60 {
      %c0_44 = arith.constant 0 : index
      %c0_45 = arith.constant 0 : index
      %61 = vector.load %arg24[%c0_44, %c0_45] : memref<8x128xf32, #tpu.memory_space<vmem>>, vector<8x128xf32>
      %62 = tpu.concatenate %61, %3 in 1 : vector<8x128xf32>, vector<8x128xf32> -> vector<8x256xf32>
      %c0_46 = arith.constant 0 : index
      %c0_47 = arith.constant 0 : index
      %63 = vector.load %arg14[%c0_46, %c0_47] : memref<256x128xf32, #tpu.memory_space<vmem>>, vector<256x128xf32>
      %cst_48 = arith.constant dense<0.000000e+00> : vector<8x128xf32>
      %64 = tpu.matmul %62, %63, %cst_48 {dimension_numbers = #tpu.dot_dimension_numbers<[1], [0], [0], [1], [0, 0, 1, 1], [], []>} : vector<8x256xf32>, vector<256x128xf32>, vector<8x128xf32> -> vector<8x128xf32>
      %c0_49 = arith.constant 0 : index
      %c0_50 = arith.constant 0 : index
      %65 = vector.load %arg15[%c0_49, %c0_50] : memref<1x128xf32, #tpu.memory_space<vmem>>, vector<1x128xf32>
      %66 = vector.broadcast %65 : vector<1x128xf32> to vector<8x128xf32>
      %67 = arith.addf %64, %66 : vector<8x128xf32>
      %cst_51 = arith.constant 0.000000e+00 : f32
      %68 = vector.broadcast %cst_51 : f32 to vector<8x128xf32>
      %69 = arith.maximumf %67, %68 : vector<8x128xf32>
      %c0_52 = arith.constant 0 : index
      %c0_53 = arith.constant 0 : index
      %70 = vector.load %arg16[%c0_52, %c0_53] : memref<128x128xf32, #tpu.memory_space<vmem>>, vector<128x128xf32>
      %cst_54 = arith.constant dense<0.000000e+00> : vector<8x128xf32>
      %71 = tpu.matmul %69, %70, %cst_54 {dimension_numbers = #tpu.dot_dimension_numbers<[1], [0], [0], [1], [0, 0, 1, 1], [], []>} : vector<8x128xf32>, vector<128x128xf32>, vector<8x128xf32> -> vector<8x128xf32>
      %c0_55 = arith.constant 0 : index
      %c0_56 = arith.constant 0 : index
      %72 = vector.load %arg17[%c0_55, %c0_56] : memref<1x128xf32, #tpu.memory_space<vmem>>, vector<1x128xf32>
      %73 = vector.broadcast %72 : vector<1x128xf32> to vector<8x128xf32>
      %74 = arith.addf %71, %73 : vector<8x128xf32>
      %cst_57 = arith.constant 0.000000e+00 : f32
      %75 = vector.broadcast %cst_57 : f32 to vector<8x128xf32>
      %76 = arith.maximumf %74, %75 : vector<8x128xf32>
      %c0_58 = arith.constant 0 : index
      %c0_59 = arith.constant 0 : index
      %77 = vector.load %arg18[%c0_58, %c0_59] : memref<128x128xf32, #tpu.memory_space<vmem>>, vector<128x128xf32>
      %cst_60 = arith.constant dense<0.000000e+00> : vector<8x128xf32>
      %78 = tpu.matmul %76, %77, %cst_60 {dimension_numbers = #tpu.dot_dimension_numbers<[1], [0], [0], [1], [0, 0, 1, 1], [], []>} : vector<8x128xf32>, vector<128x128xf32>, vector<8x128xf32> -> vector<8x128xf32>
      %c0_61 = arith.constant 0 : index
      %c0_62 = arith.constant 0 : index
      %79 = vector.load %arg19[%c0_61, %c0_62] : memref<1x128xf32, #tpu.memory_space<vmem>>, vector<1x128xf32>
      %80 = vector.broadcast %79 : vector<1x128xf32> to vector<8x128xf32>
      %81 = arith.addf %78, %80 : vector<8x128xf32>
      %cst_63 = arith.constant 0.000000e+00 : f32
      %82 = vector.broadcast %cst_63 : f32 to vector<8x128xf32>
      %83 = arith.maximumf %81, %82 : vector<8x128xf32>
      %c0_64 = arith.constant 0 : index
      %c0_65 = arith.constant 0 : index
      %84 = vector.load %arg20[%c0_64, %c0_65] : memref<128x128xf32, #tpu.memory_space<vmem>>, vector<128x128xf32>
      %cst_66 = arith.constant dense<0.000000e+00> : vector<8x128xf32>
      %85 = tpu.matmul %83, %84, %cst_66 {dimension_numbers = #tpu.dot_dimension_numbers<[1], [0], [0], [1], [0, 0, 1, 1], [], []>} : vector<8x128xf32>, vector<128x128xf32>, vector<8x128xf32> -> vector<8x128xf32>
      %c0_67 = arith.constant 0 : index
      %c0_68 = arith.constant 0 : index
      %86 = vector.load %arg21[%c0_67, %c0_68] : memref<1x128xf32, #tpu.memory_space<vmem>>, vector<1x128xf32>
      %87 = vector.broadcast %86 : vector<1x128xf32> to vector<8x128xf32>
      %88 = arith.addf %85, %87 : vector<8x128xf32>
      %cst_69 = arith.constant 0.000000e+00 : f32
      %89 = vector.broadcast %cst_69 : f32 to vector<8x128xf32>
      %90 = arith.maximumf %88, %89 : vector<8x128xf32>
      %c0_70 = arith.constant 0 : index
      %c0_71 = arith.constant 0 : index
      %91 = vector.load %arg22[%c0_70, %c0_71] : memref<8x128xf32, #tpu.memory_space<vmem>>, vector<8x128xf32>
      tpu.vector_store %arg22[%c0_70, %c0_71], %90 {strides = array<i32>} : memref<8x128xf32, #tpu.memory_space<vmem>>, vector<8x128xf32>,
    } else {
    }
    return
  }
  func.func @transform_0(%arg0: i32) -> (i32, i32) {
    %c0_i32 = arith.constant 0 : i32
    %c0_i32_0 = arith.constant 0 : i32
    %c0_i32_1 = arith.constant 0 : i32
    return %c0_i32, %c0_i32_0 : i32, i32
  }
  func.func @transform_1(%arg0: i32) -> (i32, i32) {
    %c0_i32 = arith.constant 0 : i32
    %c0_i32_0 = arith.constant 0 : i32
    return %arg0, %c0_i32 : i32, i32
  }
  func.func @transform_2(%arg0: i32) -> (i32, i32) {
    %c0_i32 = arith.constant 0 : i32
    %c0_i32_0 = arith.constant 0 : i32
    return %arg0, %c0_i32 : i32, i32
  }
  func.func @transform_3(%arg0: i32) -> (i32, i32) {
    %c0_i32 = arith.constant 0 : i32
    %c0_i32_0 = arith.constant 0 : i32
    return %arg0, %c0_i32 : i32, i32
  }
  func.func @transform_4(%arg0: i32) -> (i32, i32) {
    %c0_i32 = arith.constant 0 : i32
    %c0_i32_0 = arith.constant 0 : i32
    return %c0_i32, %arg0 : i32, i32
  }
  func.func @transform_5(%arg0: i32) -> (i32, i32) {
    %c0_i32 = arith.constant 0 : i32
    %c0_i32_0 = arith.constant 0 : i32
    %c0_i32_1 = arith.constant 0 : i32
    return %c0_i32, %c0_i32_0 : i32, i32
  }
  func.func @transform_6(%arg0: i32) -> (i32, i32) {
    %c0_i32 = arith.constant 0 : i32
    %c0_i32_0 = arith.constant 0 : i32
    %c0_i32_1 = arith.constant 0 : i32
    return %c0_i32, %c0_i32_0 : i32, i32
  }
  func.func @transform_7(%arg0: i32) -> (i32, i32) {
    %c0_i32 = arith.constant 0 : i32
    %c0_i32_0 = arith.constant 0 : i32
    %c0_i32_1 = arith.constant 0 : i32
    return %c0_i32, %c0_i32_0 : i32, i32
  }
  func.func @transform_8(%arg0: i32) -> (i32, i32) {
    %c0_i32 = arith.constant 0 : i32
    %c0_i32_0 = arith.constant 0 : i32
    %c0_i32_1 = arith.constant 0 : i32
    return %c0_i32, %c0_i32_0 : i32, i32
  }
  func.func @transform_9(%arg0: i32) -> (i32, i32) {
    %c0_i32 = arith.constant 0 : i32
    %c0_i32_0 = arith.constant 0 : i32
    %c0_i32_1 = arith.constant 0 : i32
    return %c0_i32, %c0_i32_0 : i32, i32
  }
  func.func @transform_10(%arg0: i32) -> (i32, i32) {
    %c0_i32 = arith.constant 0 : i32
    %c0_i32_0 = arith.constant 0 : i32
    %c0_i32_1 = arith.constant 0 : i32
    return %c0_i32, %c0_i32_0 : i32, i32
  }
  func.func @transform_11(%arg0: i32) -> (i32, i32) {
    %c0_i32 = arith.constant 0 : i32
    %c0_i32_0 = arith.constant 0 : i32
    %c0_i32_1 = arith.constant 0 : i32
    return %c0_i32, %c0_i32_0 : i32, i32
  }
  func.func @transform_12(%arg0: i32) -> (i32, i32) {
    %c0_i32 = arith.constant 0 : i32
    %c0_i32_0 = arith.constant 0 : i32
    %c0_i32_1 = arith.constant 0 : i32
    return %c0_i32, %c0_i32_0 : i32, i32
  }
  func.func @transform_13(%arg0: i32) -> (i32, i32) {
    %c0_i32 = arith.constant 0 : i32
    %c0_i32_0 = arith.constant 0 : i32
    %c0_i32_1 = arith.constant 0 : i32
    return %c0_i32, %c0_i32_0 : i32, i32
  }
  func.func @transform_14(%arg0: i32) -> (i32, i32) {
    %c0_i32 = arith.constant 0 : i32
    %c0_i32_0 = arith.constant 0 : i32
    %c0_i32_1 = arith.constant 0 : i32
    return %c0_i32, %c0_i32_0 : i32, i32
  }
  func.func @transform_15(%arg0: i32) -> (i32, i32) {
    %c0_i32 = arith.constant 0 : i32
    %c0_i32_0 = arith.constant 0 : i32
    %c0_i32_1 = arith.constant 0 : i32
    return %c0_i32, %c0_i32_0 : i32, i32
  }
  func.func @transform_16(%arg0: i32) -> (i32, i32) {
    %c0_i32 = arith.constant 0 : i32
    %c0_i32_0 = arith.constant 0 : i32
    %c0_i32_1 = arith.constant 0 : i32
    return %c0_i32, %c0_i32_0 : i32, i32
  }
  func.func @transform_17(%arg0: i32) -> (i32, i32) {
    %c0_i32 = arith.constant 0 : i32
    %c0_i32_0 = arith.constant 0 : i32
    %c0_i32_1 = arith.constant 0 : i32
    return %c0_i32, %c0_i32_0 : i32, i32
  }
  func.func @transform_18(%arg0: i32) -> (i32, i32) {
    %c0_i32 = arith.constant 0 : i32
    %c0_i32_0 = arith.constant 0 : i32
    %c0_i32_1 = arith.constant 0 : i32
    return %c0_i32, %c0_i32_0 : i32, i32
  }
  func.func @transform_19(%arg0: i32) -> (i32, i32) {
    %c0_i32 = arith.constant 0 : i32
    %c0_i32_0 = arith.constant 0 : i32
    %c0_i32_1 = arith.constant 0 : i32
    return %c0_i32, %c0_i32_0 : i32, i32
  }
  func.func @transform_20(%arg0: i32) -> (i32, i32) {
    %c0_i32 = arith.constant 0 : i32
    %c0_i32_0 = arith.constant 0 : i32
    %c0_i32_1 = arith.constant 0 : i32
    return %c0_i32, %c0_i32_0 : i32, i32
  }
  func.func @transform_21(%arg0: i32) -> (i32, i32) {
    %c0_i32 = arith.constant 0 : i32
    %c0_i32_0 = arith.constant 0 : i32
    %c0_i32_1 = arith.constant 0 : i32
    return %c0_i32, %c0_i32_0 : i32, i32
  }
  func.func @transform_22(%arg0: i32) -> (i32, i32) {
    %c0_i32 = arith.constant 0 : i32
    %c0_i32_0 = arith.constant 0 : i32
    return %arg0, %c0_i32 : i32, i32
  }
}

</mosaic_0001>

<bundles_post_ra>
// kernel: tpu_custom_call.1
= control target key start
LH: loop header
LB: loop body
LE: loop exit
PB: predicated region body
PF: predicated region fallthrough
CT: control target
= control target key end

     0   :  { %s4394_s0 = inlined_call_operand.vmem [shape: f32[8,128], index: 0, kind: input, shape index: {}]   ;;  %s4395_s1 = inlined_call_operand.hbm [shape: f32[128,128], index: 1, kind: input, shape index: {}]   ;;  %s4396_s2 = inlined_call_operand.vmem [shape: s32[128,1], index: 2, kind: input, shape index: {}]   ;;  %s4397_s3 = inlined_call_operand.vmem [shape: s32[128,1], index: 3, kind: input, shape index: {}]   ;;  %s4398_s4 = inlined_call_operand.vmem [shape: s32[1,128], index: 4, kind: input, shape index: {}]   ;;  %s4399_s5 = inlined_call_operand.hbm [shape: f32[384,128], index: 5, kind: input, shape index: {}]   ;;  %s4400_s6 = inlined_call_operand.vmem [shape: f32[1,128], index: 6, kind: input, shape index: {}]   ;;  %s4401_s7 = inlined_call_operand.hbm [shape: f32[128,128], index: 7, kind: input, shape index: {}]   ;;  %s4402_s8 = inlined_call_operand.vmem [shape: f32[1,128], index: 8, kind: input, shape index: {}]   ;;  %s4403_s9 = inlined_call_operand.hbm [shape: f32[128,128], index: 9, kind: input, shape index: {}]   ;;  %s4404_s10 = inlined_call_operand.vmem [shape: f32[1,128], index: 10, kind: input, shape index: {}]   ;;  %s4405_s11 = inlined_call_operand.hbm [shape: f32[128,128], index: 11, kind: input, shape index: {}]   ;;  %s4406_s12 = inlined_call_operand.vmem [shape: f32[1,128], index: 12, kind: input, shape index: {}]   ;;  %s4407_s13 = inlined_call_operand.vmem [shape: f32[256,128], index: 13, kind: input, shape index: {}]   ;;  %s4408_s14 = inlined_call_operand.vmem [shape: f32[1,128], index: 14, kind: input, shape index: {}]   ;;  %s4409_s15 = inlined_call_operand.hbm [shape: f32[128,128], index: 15, kind: input, shape index: {}]   ;;  %s4410_s16 = inlined_call_operand.vmem [shape: f32[1,128], index: 16, kind: input, shape index: {}]   ;;  %s4411_s17 = inlined_call_operand.hbm [shape: f32[128,128], index: 17, kind: input, shape index: {}]   ;;  %s4412_s18 = inlined_call_operand.vmem [shape: f32[1,128], index: 18, kind: input, shape index: {}]   ;;  %s4413_s19 = inlined_call_operand.hbm [shape: f32[128,128], index: 19, kind: input, shape index: {}]   ;;  %s4414_s20 = inlined_call_operand.vmem [shape: f32[1,128], index: 20, kind: input, shape index: {}]   ;;  %s4415_s21 = inlined_call_operand.hbm [shape: f32[8,128], index: 21, kind: output, shape index: {0}]   ;;  %s4416_s22 = inlined_call_operand.hbm [shape: f32[128,128], index: 22, kind: output, shape index: {1}]  }
   0x1   :  { %4423 = sst [smem:[#allocation27_spill]] %s4394_s0 }
   0x2   :  { %4424 = sst [smem:[#allocation28_spill]] %s4395_s1 }
   0x3   :  { %4425 = sst [smem:[#allocation29_spill]] %s4396_s2 }
   0x4   :  { %4426 = sst [smem:[#allocation30_spill]] %s4397_s3 }
   0x5   :  { %4427 = sst [smem:[#allocation31_spill]] %s4398_s4 }
   0x6   :  { %4428 = sst [smem:[#allocation32_spill]] %s4399_s5 }
   0x7   :  { %4429 = sst [smem:[#allocation33_spill]] %s4400_s6 }
   0x8   :  { %4430 = sst [smem:[#allocation34_spill]] %s4415_s21 }
   0x9   :  { %28 = vsyncpa [#allocation4], 0 }
   0xa   :  { %29 = vsyncpa [#allocation7], 0 }
   0xb   :  { %30 = vsyncpa [#allocation10], 0 }
   0xc   :  { %31 = vsyncpa [#allocation13], 0 }
   0xd   :  { %32 = vsyncpa [#allocation16], 0 }
   0xe   :  { %33 = vsyncpa [#allocation5], 0 }
   0xf   :  { %34 = vsyncpa [#allocation19], 0  ;;  %s3638_s3 = smov [#allocation6]   ;;  %s3639_s29 = smov [#allocation9]  }
  0x10   :  { %s60_s28 = sshll.u32 %s3638_s3, 4  ;;  %s88_s30 = sshll.u32 %s3639_s29, 4  ;;  %s61_s28 = int_to_ptr.vmem [resolvable:$true] %s60_s28  ;;  %s3770_s30 = int_to_ptr.vmem [resolvable:$true] %s88_s30 }
  0x11   :  { %s4431_s23 = sld [smem:[#allocation32_spill]] }
  0x17   :  { %s3404_s1 = scalar_lea.hbm %s4431_s23, 6144 }
  0x18   :  { %p3405_p0 = scmp.ne.s32.totalorder %s4431_s23, %s3404_s1  ;;  %p3408_p1 = scmp.lt.u32.totalorder %s3404_s1, %s4431_s23 }
  0x1a   :  { %p3410_p2 = pnand %p3408_p1, %p3405_p0 }
  0x1c   :  { %3413 = shalt.err (!%p3410_p2)
}
  0x1d   :  { %s3414_s26 = scalar_lea.vmem %s61_s28, 6144  ;;  %p3419_p4 = scmp.lt.s32.totalorder %s61_s28, %s61_s28 }
  0x1e   :  { %p3415_p3 = scmp.ne.s32.totalorder %s61_s28, %s3414_s26  ;;  %p3420_p5 = scmp.lt.s32.totalorder %s3414_s26, %s3414_s26 }
  0x20   :  { %p3421_p6 = por %p3420_p5, %p3419_p4 }
  0x22   :  { %p3422_p7 = pnand %p3421_p6, %p3415_p3 }
  0x24   :  { %3425 = shalt.err (!%p3422_p7)
}
  0x25   :  { %s3640_s2 = smov 128   ;;  %s3641_s27 = smov 8  }
  0x26   :  { %66 = dma.hbm_to_vmem [thread:$0]  %s4431_s23, 6144, %s61_s28, [#allocation7], %s3640_s2, %s3640_s2, %s3641_s27  }
  0x27   :  { %s3426_s1 = scalar_lea.hbm %s4403_s9, 2048 }
  0x28   :  { %p3427_p8 = scmp.ne.s32.totalorder %s4403_s9, %s3426_s1  ;;  %p3430_p9 = scmp.lt.u32.totalorder %s3426_s1, %s4403_s9 }
  0x2a   :  { %p3432_p10 = pnand %p3430_p9, %p3427_p8 }
  0x2c   :  { %3435 = shalt.err (!%p3432_p10)
}
  0x2d   :  { %s3436_s26 = scalar_lea.vmem %s3770_s30, 2048  ;;  %p3441_p12 = scmp.lt.s32.totalorder %s3770_s30, %s3770_s30 }
  0x2e   :  { %p3437_p11 = scmp.ne.s32.totalorder %s3770_s30, %s3436_s26  ;;  %p3442_p13 = scmp.lt.s32.totalorder %s3436_s26, %s3436_s26 }
  0x30   :  { %p3443_p0 = por %p3442_p13, %p3441_p12 }
  0x32   :  { %p3444_p1 = pnand %p3443_p0, %p3437_p11 }
  0x34   :  { %3447 = shalt.err (!%p3444_p1)
}
  0x35   :  { %94 = dma.hbm_to_vmem [thread:$0]  %s4403_s9, 2048, %s3770_s30, [#allocation10], %s3640_s2, %s3640_s2, %s3641_s27  }
  0x36   :  { %s3642_s3 = smov [#allocation12]   ;;  %s3643_s4 = smov [#allocation3]  }
  0x37   :  { %s120_s29 = sshll.u32 %s3642_s3, 4  ;;  %s42_s0 = sshll.u32 %s3643_s4, 4  ;;  %s121_s29 = int_to_ptr.vmem [resolvable:$true] %s120_s29  ;;  %s3807_s0 = int_to_ptr.vmem [resolvable:$true] %s42_s0 }
  0x38   :  { %s3448_s24 = scalar_lea.hbm %s4409_s15, 2048 }
  0x39   :  { %p3449_p2 = scmp.ne.s32.totalorder %s4409_s15, %s3448_s24  ;;  %p3452_p3 = scmp.lt.u32.totalorder %s3448_s24, %s4409_s15 }
  0x3b   :  { %p3454_p4 = pnand %p3452_p3, %p3449_p2 }
  0x3d   :  { %3457 = shalt.err (!%p3454_p4)
}
  0x3e   :  { %s3458_s9 = scalar_lea.vmem %s121_s29, 2048  ;;  %p3463_p6 = scmp.lt.s32.totalorder %s121_s29, %s121_s29 }
  0x3f   :  { %p3459_p5 = scmp.ne.s32.totalorder %s121_s29, %s3458_s9  ;;  %p3464_p7 = scmp.lt.s32.totalorder %s3458_s9, %s3458_s9 }
  0x41   :  { %p3465_p8 = por %p3464_p7, %p3463_p6 }
  0x43   :  { %p3466_p9 = pnand %p3465_p8, %p3459_p5 }
  0x45   :  { %3469 = shalt.err (!%p3466_p9)
}
  0x46   :  { %126 = dma.hbm_to_vmem [thread:$0]  %s4409_s15, 2048, %s121_s29, [#allocation13], %s3640_s2, %s3640_s2, %s3641_s27  }
  0x47   :  { %s4432_s21 = sld [smem:[#allocation28_spill]] }
  0x4d   :  { %s3470_s4 = scalar_lea.hbm %s4432_s21, 2048 }
  0x4e   :  { %p3471_p10 = scmp.ne.s32.totalorder %s4432_s21, %s3470_s4  ;;  %p3474_p11 = scmp.lt.u32.totalorder %s3470_s4, %s4432_s21 }
  0x50   :  { %p3476_p12 = pnand %p3474_p11, %p3471_p10 }
  0x52   :  { %3479 = shalt.err (!%p3476_p12)
}
  0x53   :  { %s3480_s25 = scalar_lea.vmem %s3807_s0, 2048  ;;  %p3485_p0 = scmp.lt.s32.totalorder %s3807_s0, %s3807_s0 }
  0x54   :  { %p3481_p13 = scmp.ne.s32.totalorder %s3807_s0, %s3480_s25  ;;  %p3486_p1 = scmp.lt.s32.totalorder %s3480_s25, %s3480_s25 }
  0x56   :  { %p3487_p2 = por %p3486_p1, %p3485_p0 }
  0x58   :  { %p3488_p3 = pnand %p3487_p2, %p3481_p13 }
  0x5a   :  { %3491 = shalt.err (!%p3488_p3)
}
  0x5b   :  { %48 = dma.hbm_to_vmem [thread:$0]  %s4432_s21, 2048, %s3807_s0, [#allocation4], %s3640_s2, %s3640_s2, %s3641_s27  }
  0x5c   :  { %s3644_s26 = smov [#allocation8]   ;;  %s3645_s30 = smov [#allocation11]  }
  0x5d   :  { %s74_s9 = sshll.u32 %s3644_s26, 4  ;;  %s102_s28 = sshll.u32 %s3645_s30, 4  ;;  %s75_s9 = int_to_ptr.vmem [resolvable:$true] %s74_s9  ;;  %s3844_s28 = int_to_ptr.vmem [resolvable:$true] %s102_s28 }
  0x5e   :  { %s3492_s4 = scalar_lea.hbm %s4401_s7, 2048 }
  0x5f   :  { %p3493_p4 = scmp.ne.s32.totalorder %s4401_s7, %s3492_s4  ;;  %p3496_p5 = scmp.lt.u32.totalorder %s3492_s4, %s4401_s7 }
  0x61   :  { %p3498_p6 = pnand %p3496_p5, %p3493_p4 }
  0x63   :  { %3501 = shalt.err (!%p3498_p6)
}
  0x64   :  { %s3502_s0 = scalar_lea.vmem %s75_s9, 2048  ;;  %p3507_p8 = scmp.lt.s32.totalorder %s75_s9, %s75_s9 }
  0x65   :  { %p3503_p7 = scmp.ne.s32.totalorder %s75_s9, %s3502_s0  ;;  %p3508_p9 = scmp.lt.s32.totalorder %s3502_s0, %s3502_s0 }
  0x67   :  { %p3509_p10 = por %p3508_p9, %p3507_p8 }
  0x69   :  { %p3510_p11 = pnand %p3509_p10, %p3503_p7 }
  0x6b   :  { %3513 = shalt.err (!%p3510_p11)
}
  0x6c   :  { %80 = dma.hbm_to_vmem [thread:$0]  %s4401_s7, 2048, %s75_s9, [#allocation7], %s3640_s2, %s3640_s2, %s3641_s27  }
  0x6d   :  { %s3514_s26 = scalar_lea.hbm %s4405_s11, 2048 }
  0x6e   :  { %p3515_p12 = scmp.ne.s32.totalorder %s4405_s11, %s3514_s26  ;;  %p3518_p13 = scmp.lt.u32.totalorder %s3514_s26, %s4405_s11 }
  0x70   :  { %p3520_p0 = pnand %p3518_p13, %p3515_p12 }
  0x72   :  { %3523 = shalt.err (!%p3520_p0)
}
  0x73   :  { %s3524_s1 = scalar_lea.vmem %s3844_s28, 2048  ;;  %p3529_p2 = scmp.lt.s32.totalorder %s3844_s28, %s3844_s28 }
  0x74   :  { %p3525_p1 = scmp.ne.s32.totalorder %s3844_s28, %s3524_s1  ;;  %p3530_p3 = scmp.lt.s32.totalorder %s3524_s1, %s3524_s1 }
  0x76   :  { %p3531_p4 = por %p3530_p3, %p3529_p2 }
  0x78   :  { %p3532_p5 = pnand %p3531_p4, %p3525_p1 }
  0x7a   :  { %3535 = shalt.err (!%p3532_p5)
}
  0x7b   :  { %108 = dma.hbm_to_vmem [thread:$0]  %s4405_s11, 2048, %s3844_s28, [#allocation10], %s3640_s2, %s3640_s2, %s3641_s27  }
  0x7c   :  { %s3646_s5 = smov [#allocation14]   ;;  %s3647_s6 = smov [#allocation15]  }
  0x7d   :  { %s134_s24 = sshll.u32 %s3646_s5, 4  ;;  %s148_s0 = sshll.u32 %s3647_s6, 4  ;;  %s135_s24 = int_to_ptr.vmem [resolvable:$true] %s134_s24  ;;  %s3881_s0 = int_to_ptr.vmem [resolvable:$true] %s148_s0 }
  0x7e   :  { %s3536_s15 = scalar_lea.hbm %s4411_s17, 2048 }
  0x7f   :  { %p3537_p6 = scmp.ne.s32.totalorder %s4411_s17, %s3536_s15  ;;  %p3540_p7 = scmp.lt.u32.totalorder %s3536_s15, %s4411_s17 }
  0x81   :  { %p3542_p8 = pnand %p3540_p7, %p3537_p6 }
  0x83   :  { %3545 = shalt.err (!%p3542_p8)
}
  0x84   :  { %s3546_s11 = scalar_lea.vmem %s135_s24, 2048  ;;  %p3551_p10 = scmp.lt.s32.totalorder %s135_s24, %s135_s24 }
  0x85   :  { %p3547_p9 = scmp.ne.s32.totalorder %s135_s24, %s3546_s11  ;;  %p3552_p11 = scmp.lt.s32.totalorder %s3546_s11, %s3546_s11 }
  0x87   :  { %p3553_p12 = por %p3552_p11, %p3551_p10 }
  0x89   :  { %p3554_p13 = pnand %p3553_p12, %p3547_p9 }
  0x8b   :  { %3557 = shalt.err (!%p3554_p13)
}
  0x8c   :  { %140 = dma.hbm_to_vmem [thread:$0]  %s4411_s17, 2048, %s135_s24, [#allocation13], %s3640_s2, %s3640_s2, %s3641_s27  }
  0x8d   :  { %s3558_s7 = scalar_lea.hbm %s4413_s19, 2048 }
  0x8e   :  { %p3559_p0 = scmp.ne.s32.totalorder %s4413_s19, %s3558_s7  ;;  %p3562_p1 = scmp.lt.u32.totalorder %s3558_s7, %s4413_s19 }
  0x90   :  { %p3564_p2 = pnand %p3562_p1, %p3559_p0 }
  0x92   :  { %3567 = shalt.err (!%p3564_p2)
}
  0x93   :  { %s3568_s25 = scalar_lea.vmem %s3881_s0, 2048  ;;  %p3573_p4 = scmp.lt.s32.totalorder %s3881_s0, %s3881_s0 }
  0x94   :  { %p3569_p3 = scmp.ne.s32.totalorder %s3881_s0, %s3568_s25  ;;  %p3574_p5 = scmp.lt.s32.totalorder %s3568_s25, %s3568_s25 }
  0x96   :  { %p3575_p6 = por %p3574_p5, %p3573_p4 }
  0x98   :  { %p3576_p7 = pnand %p3575_p6, %p3569_p3 }
  0x9a   :  { %3579 = shalt.err (!%p3576_p7)
}
  0x9b   :  { %154 = dma.hbm_to_vmem [thread:$0]  %s4413_s19, 2048, %s3881_s0, [#allocation16], %s3640_s2, %s3640_s2, %s3641_s27  }
  0x9c   :  { %3624 = dma.done.wait [#allocation4], 2048  }
  0x9d   :  { %3625 = vsyncadd [#allocation4], 4294965248 }
  0x9e   :  { %3626 = dma.done.wait [#allocation7], 8192  }
  0x9f   :  { %3627 = vsyncadd [#allocation7], 4294959104 }
  0xa0   :  { %3628 = dma.done.wait [#allocation10], 4096  }
  0xa1   :  { %3629 = vsyncadd [#allocation10], 4294963200 }
  0xa2   :  { %3630 = dma.done.wait [#allocation13], 4096  }
  0xa3   :  { %3631 = vsyncadd [#allocation13], 4294963200 }
  0xa4   :  { %3632 = dma.done.wait [#allocation16], 2048  }
  0xa5   :  { %3633 = vsyncadd [#allocation16], 4294965248  ;;  %v3648_v0 = vmov 0   ;;  %s4433_s26 = sld [smem:[#allocation30_spill]]  ;;  %s4434_s11 = sld [smem:[#allocation29_spill]]  ;;  %v832_v34 = vld [vmem:[#allocation6 + $0x80] sm:$0xff]  ;;  %v219_v40 = vlaneseq }
  0xa6   :  { %3402 = vset.pattern.permute.xlu1 %v3648_v0  ;;  %3401 = vset.pattern.permute.xlu0 %v3648_v0  ;;  %s4435_s15 = sld [smem:[#allocation27_spill]]  ;;  %v833_v35 = vld [vmem:[#allocation6 + $0x88] sm:$0xff]  ;;  %v848_v37 = vld [vmem:[#allocation6 + $0x100] sm:$0xff]  ;;  %v850_v42 = vld [vmem:[#allocation6 + $0x110] sm:$0xff]  ;;  %vm413_vm0 = vcmask 64512   ;;  %v3649_v46 = vmov 0.0  }
  0xa7   :  { %v3096_v36 = vpack.c.bf16 %v833_v35, %v832_v34  ;;  %v849_v38 = vld [vmem:[#allocation6 + $0x108] sm:$0xff]  ;;  %v4018_v41 = vand.u32 127, %v219_v40  ;;  %v851_v43 = vld [vmem:[#allocation6 + $0x118] sm:$0xff]  ;;  %v816_v49 = vld [vmem:[#allocation6] sm:$0xff]  ;;  %s4436_s25 = sld [smem:[#allocation33_spill]]  ;;  %s4437_s23 = sld [smem:[#allocation31_spill]] }
  0xa8   :  { %v3128_v39 = vpack.c.bf16 %v849_v38, %v848_v37  ;;  %v817_v50 = vld [vmem:[#allocation6 + $0x8] sm:$0xff]  ;;  %v834_v51 = vld [vmem:[#allocation6 + $0x90] sm:$0xff]  ;;  %v3132_v52 = vpack.c.bf16 %v851_v43, %v850_v42  ;;  %v835_v53 = vld [vmem:[#allocation6 + $0x98] sm:$0xff] }
  0xa9   :  { %v852_v54 = vld [vmem:[#allocation6 + $0x120] sm:$0xff]  ;;  %v853_v55 = vld [vmem:[#allocation6 + $0x128] sm:$0xff]  ;;  %v3098_v58 = vpack.c.bf16 %v817_v50, %v816_v49  ;;  %v3100_v61 = vpack.c.bf16 %v835_v53, %v834_v51  ;;  %v818_v62 = vld [vmem:[#allocation6 + $0x10] sm:$0xff] }
  0xaa   :  { %v819_v63 = vld [vmem:[#allocation6 + $0x18] sm:$0xff]  ;;  %v836_v0 = vld [vmem:[#allocation6 + $0xa0] sm:$0xff]  ;;  %v825_v38 = vld [vmem:[#allocation6 + $0x48] sm:$0xff] }
  0xab   :  { %v204_v1 = vld [vmem:[%s4433_s26 + $0x8] sm:$0xff]  ;;  %v203_v2 = vld [vmem:[%s4433_s26] sm:$0xff]  ;;  %v189_v5 = vld [vmem:[%s4434_s11 + $0x10] sm:$0xff] }
  0xac   :  { %321 = vperm.xlu1 %3402, %v204_v1   ;;  %318 = vperm.xlu0 %3401, %v203_v2   ;;  %v188_v3 = vld [vmem:[%s4434_s11 + $0x8] sm:$0xff]  ;;  %v187_v4 = vld [vmem:[%s4434_s11] sm:$0xff]  ;;  %v205_v6 = vld [vmem:[%s4433_s26 + $0x10] sm:$0xff]  ;;  %v3136_v1 = vpack.c.bf16 %v853_v55, %v852_v54 }
  0xad   :  { %v190_v7 = vld [vmem:[%s4434_s11 + $0x18] sm:$0xff]  ;;  %v186_v9 = vld [vmem:[%s4435_s15] sm:$0xff]  ;;  %v192_v12 = vld [vmem:[%s4434_s11 + $0x28] sm:$0xff] }
  0xae   :  { %v206_v8 = vld [vmem:[%s4433_s26 + $0x18] sm:$0xff]  ;;  %2706 = vmatprep.subr.mxu1 %v186_v9  ;;  %2680 = vmatprep.subr.mxu0 %v186_v9  ;;  %v191_v10 = vld [vmem:[%s4434_s11 + $0x20] sm:$0xff]  ;;  %v208_v13 = vld [vmem:[%s4433_s26 + $0x28] sm:$0xff] }
  0xaf   :  { %2707 = vmatpush3.msra.mxu1 %v186_v9  ;;  %2681 = vmatpush3.msra.mxu0 %v186_v9  ;;  %v207_v11 = vld [vmem:[%s4433_s26 + $0x20] sm:$0xff]  ;;  %v193_v14 = vld [vmem:[%s4434_s11 + $0x30] sm:$0xff]  ;;  %v194_v16 = vld [vmem:[%s4434_s11 + $0x38] sm:$0xff] }
  0xb0   :  { %225 = vperm.xlu1 %3402, %v188_v3   ;;  %222 = vperm.xlu0 %3401, %v187_v4   ;;  %v209_v15 = vld [vmem:[%s4433_s26 + $0x30] sm:$0xff]  ;;  %v210_v17 = vld [vmem:[%s4433_s26 + $0x38] sm:$0xff]  ;;  %v195_v18 = vld [vmem:[%s4434_s11 + $0x40] sm:$0xff] }
  0xb1   :  { %v211_v19 = vld [vmem:[%s4433_s26 + $0x40] sm:$0xff]  ;;  %v196_v20 = vld [vmem:[%s4434_s11 + $0x48] sm:$0xff]  ;;  %v197_v22 = vld [vmem:[%s4434_s11 + $0x50] sm:$0xff]  ;;  %3097 = vmatprep.subr.bf16.mxu0 %v3096_v36  ;;  %3129 = vmatprep.subr.bf16.mxu1 %v3128_v39 }
  0xb2   :  { %v212_v21 = vld [vmem:[%s4433_s26 + $0x48] sm:$0xff]  ;;  %v213_v23 = vld [vmem:[%s4433_s26 + $0x50] sm:$0xff]  ;;  %v198_v24 = vld [vmem:[%s4434_s11 + $0x58] sm:$0xff] }
  0xb3   :  { %v214_v25 = vld [vmem:[%s4433_s26 + $0x58] sm:$0xff]  ;;  %v199_v26 = vld [vmem:[%s4434_s11 + $0x60] sm:$0xff]  ;;  %v200_v28 = vld [vmem:[%s4434_s11 + $0x68] sm:$0xff] }
  0xb4   :  { %228 = vperm.xlu1 %3402, %v189_v5   ;;  %324 = vperm.xlu0 %3401, %v205_v6   ;;  %v215_v27 = vld [vmem:[%s4433_s26 + $0x60] sm:$0xff]  ;;  %v216_v29 = vld [vmem:[%s4433_s26 + $0x68] sm:$0xff]  ;;  %v201_v30 = vld [vmem:[%s4434_s11 + $0x70] sm:$0xff] }
  0xb5   :  { %v217_v31 = vld [vmem:[%s4433_s26 + $0x70] sm:$0xff]  ;;  %v202_v32 = vld [vmem:[%s4434_s11 + $0x78] sm:$0xff]  ;;  %v837_v2 = vld [vmem:[#allocation6 + $0xa8] sm:$0xff] }
  0xb6   :  { %v218_v33 = vld [vmem:[%s4433_s26 + $0x78] sm:$0xff]  ;;  %v854_v3 = vld [vmem:[#allocation6 + $0x130] sm:$0xff]  ;;  %v824_v37 = vld [vmem:[#allocation6 + $0x40] sm:$0xff] }
  0xb7   :  { %v855_v4 = vld [vmem:[#allocation6 + $0x138] sm:$0xff]  ;;  %v842_v42 = vld [vmem:[#allocation6 + $0xd0] sm:$0xff]  ;;  %v844_v53 = vld [vmem:[#allocation6 + $0xe0] sm:$0xff] }
  0xb8   :  { %231 = vperm.xlu1 %3402, %v190_v7   ;;  %327 = vperm.xlu0 %3401, %v206_v8   ;;  %v3102_v7 = vpack.c.bf16 %v819_v63, %v818_v62  ;;  %v843_v43 = vld [vmem:[#allocation6 + $0xd8] sm:$0xff]  ;;  %v826_v51 = vld [vmem:[#allocation6 + $0x50] sm:$0xff]  ;;  %v845_v54 = vld [vmem:[#allocation6 + $0xe8] sm:$0xff] }
  0xb9   :  { %v3116_v50 = vpack.c.bf16 %v843_v43, %v842_v42  ;;  %v829_v62 = vld [vmem:[#allocation6 + $0x68] sm:$0xff]  ;;  %v830_v43 = vld [vmem:[#allocation6 + $0x70] sm:$0xff] }
  0xba   :  { %v861_v42 = vld [vmem:[#allocation6 + $0x168] sm:$0xff] }
  0xbc   :  { %234 = vperm.xlu1 %3402, %v191_v10   ;;  %330 = vperm.xlu0 %3401, %v207_v11   ;;  %v3104_v10 = vpack.c.bf16 %v837_v2, %v836_v0  ;;  %v820_v11 = vld [vmem:[#allocation6 + $0x20] sm:$0xff] }
  0xc0   :  { %237 = vperm.xlu1 %3402, %v192_v12   ;;  %333 = vperm.xlu0 %3401, %v208_v13   ;;  %v821_v12 = vld [vmem:[#allocation6 + $0x28] sm:$0xff]  ;;  %v838_v13 = vld [vmem:[#allocation6 + $0xb0] sm:$0xff] }
  0xc4   :  { %240 = vperm.xlu1 %3402, %v193_v14   ;;  %336 = vperm.xlu0 %3401, %v209_v15   ;;  %v3140_v14 = vpack.c.bf16 %v855_v4, %v854_v3  ;;  %v839_v15 = vld [vmem:[#allocation6 + $0xb8] sm:$0xff] }
  0xc8   :  { %243 = vperm.xlu1 %3402, %v194_v16   ;;  %339 = vperm.xlu0 %3401, %v210_v17   ;;  %v856_v16 = vld [vmem:[#allocation6 + $0x140] sm:$0xff]  ;;  %v857_v17 = vld [vmem:[#allocation6 + $0x148] sm:$0xff] }
  0xcc   :  { %246 = vperm.xlu1 %3402, %v195_v18   ;;  %342 = vperm.xlu0 %3401, %v211_v19  }
  0xd0   :  { %249 = vperm.xlu1 %3402, %v196_v20   ;;  %345 = vperm.xlu0 %3401, %v212_v21   ;;  %v3106_v20 = vpack.c.bf16 %v821_v12, %v820_v11 }
  0xd4   :  { %252 = vperm.xlu1 %3402, %v197_v22   ;;  %348 = vperm.xlu0 %3401, %v213_v23   ;;  %v3108_v23 = vpack.c.bf16 %v839_v15, %v838_v13 }
  0xd8   :  { %255 = vperm.xlu1 %3402, %v198_v24   ;;  %351 = vperm.xlu0 %3401, %v214_v25   ;;  %v822_v24 = vld [vmem:[#allocation6 + $0x30] sm:$0xff]  ;;  %v823_v25 = vld [vmem:[#allocation6 + $0x38] sm:$0xff] }
  0xdc   :  { %258 = vperm.xlu1 %3402, %v199_v26   ;;  %354 = vperm.xlu0 %3401, %v215_v27   ;;  %v840_v26 = vld [vmem:[#allocation6 + $0xc0] sm:$0xff]  ;;  %v3144_v27 = vpack.c.bf16 %v857_v17, %v856_v16 }
  0xe0   :  { %261 = vperm.xlu1 %3402, %v200_v28   ;;  %357 = vperm.xlu0 %3401, %v216_v29   ;;  %v841_v28 = vld [vmem:[#allocation6 + $0xc8] sm:$0xff]  ;;  %v858_v29 = vld [vmem:[#allocation6 + $0x150] sm:$0xff] }
  0xe1   :  { %v3112_v36 = vpack.c.bf16 %v841_v28, %v840_v26 }
  0xe4   :  { %264 = vperm.xlu1 %3402, %v201_v30   ;;  %360 = vperm.xlu0 %3401, %v217_v31   ;;  %v859_v30 = vld [vmem:[#allocation6 + $0x158] sm:$0xff] }
  0xe8   :  { %267 = vperm.xlu1 %3402, %v202_v32   ;;  %363 = vperm.xlu0 %3401, %v218_v33   ;;  %v3110_v33 = vpack.c.bf16 %v823_v25, %v822_v24 }
 0x12b   :  { %v322_v44 = vpop.permute.xlu1 %321  ;;  %v319_v45 = vpop.permute.xlu0 %318 }
 0x12c   :  { %vm366_vm1 = vcmp.eq.s32.totalorder %v4018_v41, %v322_v44  ;;  %vm365_vm2 = vcmp.eq.s32.totalorder %v4018_v41, %v319_v45 }
 0x12d   :  { %v2277_v47 = vsel %vm366_vm1, 1.0, %v3649_v46  ;;  %v2276_v48 = vsel %vm365_vm2, 1.0, %v3649_v46 }
 0x12e   :  { %2708 = vmatprep.mubr.msk.f32.mxu1 %vm413_vm0, %v2276_v48 }
 0x12f   :  { %v226_v56 = vpop.permute.xlu1 %225  ;;  %v223_v57 = vpop.permute.xlu0 %222  ;;  %2709 = vmatmul.mubr.msk.f32.vlgmr.msra.gmra.mrb[0].mxu1 %vm413_vm0, %v2277_v47  ;;  %v3114_v47 = vpack.c.bf16 %v825_v38, %v824_v37  ;;  %v847_v37 = vld [vmem:[#allocation6 + $0xf8] sm:$0xff]  ;;  %v860_v38 = vld [vmem:[#allocation6 + $0x160] sm:$0xff] }
 0x130   :  { %vm270_vm3 = vcmp.eq.s32.totalorder %v4018_v41, %v226_v56  ;;  %vm269_vm4 = vcmp.eq.s32.totalorder %v4018_v41, %v223_v57  ;;  %3131 = vmatpush3.bf16.msra.mxu1 %v3128_v39  ;;  %v3148_v39 = vpack.c.bf16 %v859_v30, %v858_v29 }
 0x131   :  { %v2261_v59 = vsel %vm270_vm3, 1.0, %v3649_v46  ;;  %v2260_v60 = vsel %vm269_vm4, 1.0, %v3649_v46  ;;  %3133 = vmatprep.subr.bf16.mxu1 %v3132_v52 }
 0x132   :  { %2682 = vmatprep.mubr.msk.f32.mxu0 %vm413_vm0, %v2260_v60  ;;  %v3120_v60 = vpack.c.bf16 %v845_v54, %v844_v53  ;;  %v803_v53 = vld [vmem:[#allocation3 + $0x18] sm:$0xff]  ;;  %v804_v54 = vld [vmem:[#allocation3 + $0x20] sm:$0xff] }
 0x133   :  { %v229_v5 = vpop.permute.xlu1 %228  ;;  %v325_v6 = vpop.permute.xlu0 %324  ;;  %2683 = vmatmul.mubr.msk.f32.vlgmr.msra.gmra.mrb[0].mxu0 %vm413_vm0, %v2261_v59 }
 0x134   :  { %vm271_vm5 = vcmp.eq.s32.totalorder %v4018_v41, %v229_v5  ;;  %vm367_vm6 = vcmp.eq.s32.totalorder %v4018_v41, %v325_v6  ;;  %3099 = vmatpush3.bf16.msra.mxu0 %v3098_v58  ;;  %3135 = vmatpush3.bf16.msra.mxu1 %v3132_v52  ;;  %v827_v52 = vld [vmem:[#allocation6 + $0x58] sm:$0xff] }
 0x135   :  { %v2262_v8 = vsel %vm271_vm5, 1.0, %v3649_v46  ;;  %v2278_v9 = vsel %vm367_vm6, 1.0, %v3649_v46  ;;  %3101 = vmatprep.subr.bf16.mxu0 %v3100_v61  ;;  %3137 = vmatprep.subr.bf16.mxu1 %v3136_v1  ;;  %v3118_v57 = vpack.c.bf16 %v827_v52, %v826_v51  ;;  %v828_v61 = vld [vmem:[#allocation6 + $0x60] sm:$0xff]  ;;  %v801_v51 = vld [vmem:[#allocation3 + $0x8] sm:$0xff]  ;;  %v802_v52 = vld [vmem:[#allocation3 + $0x10] sm:$0xff] }
 0x136   :  { %2685 = vmatprep.mubr.msk.f32.mxu0 %vm413_vm0, %v2262_v8  ;;  %2711 = vmatprep.mubr.msk.f32.mxu1 %vm413_vm0, %v2278_v9 }
 0x137   :  { %v232_v18 = vpop.permute.xlu1 %231  ;;  %v328_v19 = vpop.permute.xlu0 %327 }
 0x138   :  { %vm272_vm7 = vcmp.eq.s32.totalorder %v4018_v41, %v232_v18  ;;  %vm368_vm8 = vcmp.eq.s32.totalorder %v4018_v41, %v328_v19  ;;  %3103 = vmatpush3.bf16.msra.mxu0 %v3102_v7  ;;  %3139 = vmatpush3.bf16.msra.mxu1 %v3136_v1  ;;  %v3122_v1 = vpack.c.bf16 %v829_v62, %v828_v61  ;;  %v811_v61 = vld [vmem:[#allocation3 + $0x58] sm:$0xff]  ;;  %v812_v62 = vld [vmem:[#allocation3 + $0x60] sm:$0xff] }
 0x139   :  { %v2263_v21 = vsel %vm272_vm7, 1.0, %v3649_v46  ;;  %v2279_v22 = vsel %vm368_vm8, 1.0, %v3649_v46  ;;  %3105 = vmatprep.subr.bf16.mxu0 %v3104_v10  ;;  %3141 = vmatprep.subr.bf16.mxu1 %v3140_v14 }
 0x13a   :  { %2686 = vmatmul.mubr.msk.f32.gmra.mrb[2].mxu0 %vm413_vm0, %v2263_v21  ;;  %2712 = vmatmul.mubr.msk.f32.gmra.mrb[2].mxu1 %vm413_vm0, %v2279_v22 }
 0x13b   :  { %v235_v31 = vpop.permute.xlu1 %234  ;;  %v331_v32 = vpop.permute.xlu0 %330 }
 0x13c   :  { %vm273_vm9 = vcmp.eq.s32.totalorder %v4018_v41, %v235_v31  ;;  %vm369_vm10 = vcmp.eq.s32.totalorder %v4018_v41, %v331_v32  ;;  %3107 = vmatpush3.bf16.msra.mxu0 %v3106_v20  ;;  %3143 = vmatpush3.bf16.msra.mxu1 %v3140_v14 }
 0x13d   :  { %v2264_v34 = vsel %vm273_vm9, 1.0, %v3649_v46  ;;  %v2280_v35 = vsel %vm369_vm10, 1.0, %v3649_v46  ;;  %3109 = vmatprep.subr.bf16.mxu0 %v3108_v23  ;;  %3145 = vmatprep.subr.bf16.mxu1 %v3144_v27 }
 0x13e   :  { %2688 = vmatprep.mubr.msk.f32.mxu0 %vm413_vm0, %v2264_v34  ;;  %2714 = vmatprep.mubr.msk.f32.mxu1 %vm413_vm0, %v2280_v35 }
 0x13f   :  { %v238_v44 = vpop.permute.xlu1 %237  ;;  %v334_v45 = vpop.permute.xlu0 %333 }
 0x140   :  { %vm274_vm11 = vcmp.eq.s32.totalorder %v4018_v41, %v238_v44  ;;  %vm370_vm12 = vcmp.eq.s32.totalorder %v4018_v41, %v334_v45  ;;  %3111 = vmatpush3.bf16.msra.mxu0 %v3110_v33  ;;  %3147 = vmatpush3.bf16.msra.mxu1 %v3144_v27  ;;  %v831_v44 = vld [vmem:[#allocation6 + $0x78] sm:$0xff]  ;;  %v3152_v45 = vpack.c.bf16 %v861_v42, %v860_v38 }
 0x141   :  { %v2265_v48 = vsel %vm274_vm11, 1.0, %v3649_v46  ;;  %v2281_v49 = vsel %vm370_vm12, 1.0, %v3649_v46  ;;  %3113 = vmatprep.subr.bf16.mxu0 %v3112_v36  ;;  %3149 = vmatprep.subr.bf16.mxu1 %v3148_v39  ;;  %v846_v36 = vld [vmem:[#allocation6 + $0xf0] sm:$0xff] }
 0x142   :  { %2689 = vmatmul.mubr.msk.f32.gmra.mrb[4].mxu0 %vm413_vm0, %v2265_v48  ;;  %2715 = vmatmul.mubr.msk.f32.gmra.mrb[4].mxu1 %vm413_vm0, %v2281_v49  ;;  %v863_v48 = vld [vmem:[#allocation6 + $0x178] sm:$0xff] }
 0x143   :  { %v241_v55 = vpop.permute.xlu1 %240  ;;  %v337_v56 = vpop.permute.xlu0 %336 }
 0x144   :  { %vm275_vm13 = vcmp.eq.s32.totalorder %v4018_v41, %v241_v55  ;;  %vm371_vm14 = vcmp.eq.s32.totalorder %v4018_v41, %v337_v56  ;;  %3115 = vmatpush3.bf16.msra.mxu0 %v3114_v47  ;;  %3151 = vmatpush3.bf16.msra.mxu1 %v3148_v39  ;;  %v3124_v39 = vpack.c.bf16 %v847_v37, %v846_v36  ;;  %v805_v55 = vld [vmem:[#allocation3 + $0x28] sm:$0xff]  ;;  %v806_v56 = vld [vmem:[#allocation3 + $0x30] sm:$0xff] }
 0x145   :  { %v2266_v58 = vsel %vm275_vm13, 1.0, %v3649_v46  ;;  %v2282_v59 = vsel %vm371_vm14, 1.0, %v3649_v46  ;;  %3117 = vmatprep.subr.bf16.mxu0 %v3116_v50  ;;  %v3126_v47 = vpack.c.bf16 %v831_v44, %v830_v43  ;;  %3153 = vmatprep.subr.bf16.mxu1 %v3152_v45  ;;  %v800_v50 = vld [vmem:[#allocation3] sm:$0xff] }
 0x146   :  { %2691 = vmatprep.mubr.msk.f32.mxu0 %vm413_vm0, %v2266_v58  ;;  %2717 = vmatprep.mubr.msk.f32.mxu1 %vm413_vm0, %v2282_v59  ;;  %v808_v58 = vld [vmem:[#allocation3 + $0x40] sm:$0xff]  ;;  %v809_v59 = vld [vmem:[#allocation3 + $0x48] sm:$0xff] }
 0x147   :  { %v244_v63 = vpop.permute.xlu1 %243  ;;  %v340_v0 = vpop.permute.xlu0 %339 }
 0x148   :  { %vm276_vm15 = vcmp.eq.s32.totalorder %v4018_v41, %v244_v63  ;;  %vm372_vm1 = vcmp.eq.s32.totalorder %v4018_v41, %v340_v0  ;;  %3119 = vmatpush3.bf16.msra.mxu0 %v3118_v57  ;;  %3155 = vmatpush3.bf16.msra.mxu1 %v3152_v45  ;;  %v807_v57 = vld [vmem:[#allocation3 + $0x38] sm:$0xff]  ;;  %v813_v63 = vld [vmem:[#allocation3 + $0x68] sm:$0xff]  ;;  %v814_v0 = vld [vmem:[#allocation3 + $0x70] sm:$0xff] }
 0x149   :  { %v2267_v2 = vsel %vm276_vm15, 1.0, %v3649_v46  ;;  %v2283_v3 = vsel %vm372_vm1, 1.0, %v3649_v46  ;;  %3121 = vmatprep.subr.bf16.mxu0 %v3120_v60  ;;  %v810_v60 = vld [vmem:[#allocation3 + $0x50] sm:$0xff] }
 0x14a   :  { %2692 = vmatmul.mubr.msk.f32.gmra.mrb[6].mxu0 %vm413_vm0, %v2267_v2  ;;  %2718 = vmatmul.mubr.msk.f32.gmra.mrb[6].mxu1 %vm413_vm0, %v2283_v3  ;;  %v1177_v2 = vld [vmem:[#allocation8] sm:$0xff]  ;;  %v1178_v3 = vld [vmem:[#allocation8 + $0x8] sm:$0xff] }
 0x14b   :  { %v247_v4 = vpop.permute.xlu1 %246  ;;  %v343_v5 = vpop.permute.xlu0 %342 }
 0x14c   :  { %vm277_vm2 = vcmp.eq.s32.totalorder %v4018_v41, %v247_v4  ;;  %vm373_vm3 = vcmp.eq.s32.totalorder %v4018_v41, %v343_v5  ;;  %3123 = vmatpush3.bf16.msra.mxu0 %v3122_v1  ;;  %v815_v1 = vld [vmem:[#allocation3 + $0x78] sm:$0xff]  ;;  %v1179_v4 = vld [vmem:[#allocation8 + $0x10] sm:$0xff]  ;;  %v3160_v5 = vpack.c.bf16 %v1178_v3, %v1177_v2 }
 0x14d   :  { %v2268_v6 = vsel %vm277_vm2, 1.0, %v3649_v46  ;;  %v2284_v7 = vsel %vm373_vm3, 1.0, %v3649_v46  ;;  %3125 = vmatprep.subr.bf16.mxu0 %v3124_v39 }
 0x14e   :  { %2694 = vmatprep.mubr.msk.f32.mxu0 %vm413_vm0, %v2268_v6  ;;  %2720 = vmatprep.mubr.msk.f32.mxu1 %vm413_vm0, %v2284_v7  ;;  %v1180_v6 = vld [vmem:[#allocation8 + $0x18] sm:$0xff] }
 0x14f   :  { %v250_v8 = vpop.permute.xlu1 %249  ;;  %v346_v9 = vpop.permute.xlu0 %345  ;;  %v3164_v7 = vpack.c.bf16 %v1180_v6, %v1179_v4 }
 0x150   :  { %vm278_vm4 = vcmp.eq.s32.totalorder %v4018_v41, %v250_v8  ;;  %vm374_vm5 = vcmp.eq.s32.totalorder %v4018_v41, %v346_v9  ;;  %3127 = vmatpush3.bf16.msra.mxu0 %v3126_v47  ;;  %v1181_v8 = vld [vmem:[#allocation8 + $0x20] sm:$0xff]  ;;  %v1182_v9 = vld [vmem:[#allocation8 + $0x28] sm:$0xff] }
 0x151   :  { %v2269_v10 = vsel %vm278_vm4, 1.0, %v3649_v46  ;;  %v2285_v11 = vsel %vm374_vm5, 1.0, %v3649_v46 }
 0x152   :  { %2695 = vmatmul.mubr.msk.f32.gmra.mrb[8].mxu0 %vm413_vm0, %v2269_v10  ;;  %2721 = vmatmul.mubr.msk.f32.gmra.mrb[8].mxu1 %vm413_vm0, %v2285_v11  ;;  %v3168_v10 = vpack.c.bf16 %v1182_v9, %v1181_v8  ;;  %v1183_v11 = vld [vmem:[#allocation8 + $0x30] sm:$0xff] }
 0x153   :  { %v253_v12 = vpop.permute.xlu1 %252  ;;  %v349_v13 = vpop.permute.xlu0 %348 }
 0x154   :  { %vm279_vm6 = vcmp.eq.s32.totalorder %v4018_v41, %v253_v12  ;;  %vm375_vm7 = vcmp.eq.s32.totalorder %v4018_v41, %v349_v13  ;;  %v1184_v12 = vld [vmem:[#allocation8 + $0x38] sm:$0xff] }
 0x155   :  { %v2270_v14 = vsel %vm279_vm6, 1.0, %v3649_v46  ;;  %v2286_v15 = vsel %vm375_vm7, 1.0, %v3649_v46  ;;  %v3172_v13 = vpack.c.bf16 %v1184_v12, %v1183_v11  ;;  %v1361_v12 = vld [vmem:[#allocation9] sm:$0xff] }
 0x156   :  { %2697 = vmatprep.mubr.msk.f32.mxu0 %vm413_vm0, %v2270_v14  ;;  %2723 = vmatprep.mubr.msk.f32.mxu1 %vm413_vm0, %v2286_v15  ;;  %v1185_v14 = vld [vmem:[#allocation8 + $0x40] sm:$0xff]  ;;  %v1186_v15 = vld [vmem:[#allocation8 + $0x48] sm:$0xff] }
 0x157   :  { %v256_v16 = vpop.permute.xlu1 %255  ;;  %v352_v17 = vpop.permute.xlu0 %351 }
 0x158   :  { %vm280_vm8 = vcmp.eq.s32.totalorder %v4018_v41, %v256_v16  ;;  %vm376_vm9 = vcmp.eq.s32.totalorder %v4018_v41, %v352_v17  ;;  %v3176_v16 = vpack.c.bf16 %v1186_v15, %v1185_v14  ;;  %v1363_v14 = vld [vmem:[#allocation9 + $0x10] sm:$0xff] }
 0x159   :  { %v2271_v18 = vsel %vm280_vm8, 1.0, %v3649_v46  ;;  %v2287_v19 = vsel %vm376_vm9, 1.0, %v3649_v46 }
 0x15a   :  { %2698 = vmatmul.mubr.msk.f32.gmra.mrb[10].mxu0 %vm413_vm0, %v2271_v18  ;;  %2724 = vmatmul.mubr.msk.f32.gmra.mrb[10].mxu1 %vm413_vm0, %v2287_v19 }
 0x15b   :  { %v259_v20 = vpop.permute.xlu1 %258  ;;  %v355_v21 = vpop.permute.xlu0 %354 }
 0x15c   :  { %vm281_vm10 = vcmp.eq.s32.totalorder %v4018_v41, %v259_v20  ;;  %vm377_vm11 = vcmp.eq.s32.totalorder %v4018_v41, %v355_v21 }
 0x15d   :  { %v2272_v22 = vsel %vm281_vm10, 1.0, %v3649_v46  ;;  %v2288_v23 = vsel %vm377_vm11, 1.0, %v3649_v46 }
 0x15e   :  { %2700 = vmatprep.mubr.msk.f32.mxu0 %vm413_vm0, %v2272_v22  ;;  %2726 = vmatprep.mubr.msk.f32.mxu1 %vm413_vm0, %v2288_v23 }
 0x15f   :  { %v262_v24 = vpop.permute.xlu1 %261  ;;  %v358_v25 = vpop.permute.xlu0 %357 }
 0x160   :  { %vm282_vm12 = vcmp.eq.s32.totalorder %v4018_v41, %v262_v24  ;;  %vm378_vm13 = vcmp.eq.s32.totalorder %v4018_v41, %v358_v25 }
 0x161   :  { %v2273_v26 = vsel %vm282_vm12, 1.0, %v3649_v46  ;;  %v2289_v27 = vsel %vm378_vm13, 1.0, %v3649_v46 }
 0x162   :  { %2701 = vmatmul.mubr.msk.f32.gmra.mrb[12].mxu0 %vm413_vm0, %v2273_v26  ;;  %2727 = vmatmul.mubr.msk.f32.gmra.mrb[12].mxu1 %vm413_vm0, %v2289_v27 }
 0x163   :  { %v265_v28 = vpop.permute.xlu1 %264  ;;  %v361_v29 = vpop.permute.xlu0 %360 }
 0x164   :  { %vm283_vm14 = vcmp.eq.s32.totalorder %v4018_v41, %v265_v28  ;;  %vm379_vm15 = vcmp.eq.s32.totalorder %v4018_v41, %v361_v29 }
 0x165   :  { %v2274_v30 = vsel %vm283_vm14, 1.0, %v3649_v46  ;;  %v2290_v31 = vsel %vm379_vm15, 1.0, %v3649_v46 }
 0x166   :  { %2703 = vmatprep.mubr.msk.f32.mxu0 %vm413_vm0, %v2274_v30  ;;  %2729 = vmatprep.mubr.msk.f32.mxu1 %vm413_vm0, %v2290_v31 }
 0x167   :  { %v268_v32 = vpop.permute.xlu1 %267  ;;  %v364_v33 = vpop.permute.xlu0 %363 }
 0x168   :  { %vm284_vm1 = vcmp.eq.s32.totalorder %v4018_v41, %v268_v32  ;;  %vm380_vm2 = vcmp.eq.s32.totalorder %v4018_v41, %v364_v33  ;;  %v862_v41 = vld [vmem:[#allocation6 + $0x170] sm:$0xff] }
 0x169   :  { %v2275_v34 = vsel %vm284_vm1, 1.0, %v3649_v46  ;;  %v2291_v35 = vsel %vm380_vm2, 1.0, %v3649_v46  ;;  %v3156_v49 = vpack.c.bf16 %v863_v48, %v862_v41 }
 0x16a   :  { %2704 = vmatmul.mubr.msk.f32.gmra.mrb[14].mxu0 %vm413_vm0, %v2275_v34  ;;  %2730 = vmatmul.mubr.msk.f32.gmra.mrb[14].mxu1 %vm413_vm0, %v2291_v35  ;;  %vm3651_vm0 = vmmov 0  }
 0x16b   :  { %3157 = vmatprep.subr.bf16.mxu1 %v3156_v49  ;;  %2764 = vmatprep.mubr.f32.mxu1 %v800_v50 }
 0x16c   :  { %3159 = vmatpush3.bf16.msra.mxu1 %v3156_v49 }
 0x16d   :  { %3161 = vmatprep.subr.bf16.mxu1 %v3160_v5 }
 0x16f   :  { %2765 = vmatmul.mubr.f32.vlgmr.msra.gmra.mrb[16].mxu1 %v801_v51  ;;  %v1187_v51 = vld [vmem:[#allocation8 + $0x50] sm:$0xff] }
 0x170   :  { %2767 = vmatprep.mubr.f32.mxu1 %v802_v52  ;;  %3163 = vmatpush3.bf16.msra.mxu1 %v3160_v5  ;;  %v1188_v52 = vld [vmem:[#allocation8 + $0x58] sm:$0xff] }
 0x171   :  { %3165 = vmatprep.subr.bf16.mxu1 %v3164_v7 }
 0x173   :  { %2768 = vmatmul.mubr.f32.gmra.mrb[18].mxu1 %v803_v53  ;;  %v3180_v53 = vpack.c.bf16 %v1188_v52, %v1187_v51 }
 0x174   :  { %2770 = vmatprep.mubr.f32.mxu1 %v804_v54  ;;  %3167 = vmatpush3.bf16.msra.mxu1 %v3164_v7  ;;  %v1189_v54 = vld [vmem:[#allocation8 + $0x60] sm:$0xff] }
 0x175   :  { %3169 = vmatprep.subr.bf16.mxu1 %v3168_v10 }
 0x177   :  { %2771 = vmatmul.mubr.f32.gmra.mrb[20].mxu1 %v805_v55  ;;  %v1190_v55 = vld [vmem:[#allocation8 + $0x68] sm:$0xff] }
 0x178   :  { %2773 = vmatprep.mubr.f32.mxu1 %v806_v56  ;;  %3171 = vmatpush3.bf16.msra.mxu1 %v3168_v10  ;;  %v3184_v56 = vpack.c.bf16 %v1190_v55, %v1189_v54 }
 0x179   :  { %3173 = vmatprep.subr.bf16.mxu1 %v3172_v13 }
 0x17b   :  { %2774 = vmatmul.mubr.f32.gmra.mrb[22].mxu1 %v807_v57 }
 0x17c   :  { %2776 = vmatprep.mubr.f32.mxu1 %v808_v58  ;;  %3175 = vmatpush3.bf16.msra.mxu1 %v3172_v13  ;;  %v1362_v13 = vld [vmem:[#allocation9 + $0x8] sm:$0xff] }
 0x17d   :  { %3177 = vmatprep.subr.bf16.mxu1 %v3176_v16  ;;  %v3192_v15 = vpack.c.bf16 %v1362_v13, %v1361_v12 }
 0x17f   :  { %2777 = vmatmul.mubr.f32.gmra.mrb[24].mxu1 %v809_v59  ;;  %v1191_v59 = vld [vmem:[#allocation8 + $0x70] sm:$0xff]  ;;  %3193 = vmatprep.subr.bf16.mxu0 %v3192_v15 }
 0x180   :  { %2779 = vmatprep.mubr.f32.mxu1 %v810_v60  ;;  %3179 = vmatpush3.bf16.msra.mxu1 %v3176_v16  ;;  %v1192_v60 = vld [vmem:[#allocation8 + $0x78] sm:$0xff] }
 0x181   :  { %3181 = vmatprep.subr.bf16.mxu1 %v3180_v53  ;;  %v1364_v16 = vld [vmem:[#allocation9 + $0x18] sm:$0xff] }
 0x183   :  { %2780 = vmatmul.mubr.f32.gmra.mrb[26].mxu1 %v811_v61  ;;  %v3188_v61 = vpack.c.bf16 %v1192_v60, %v1191_v59 }
 0x184   :  { %2782 = vmatprep.mubr.f32.mxu1 %v812_v62  ;;  %3183 = vmatpush3.bf16.msra.mxu1 %v3180_v53 }
 0x185   :  { %3185 = vmatprep.subr.bf16.mxu1 %v3184_v56 }
 0x187   :  { %2783 = vmatmul.mubr.f32.gmra.mrb[28].mxu1 %v813_v63 }
 0x188   :  { %2785 = vmatprep.mubr.f32.mxu1 %v814_v0  ;;  %3187 = vmatpush3.bf16.msra.mxu1 %v3184_v56 }
 0x189   :  { %3189 = vmatprep.subr.bf16.mxu1 %v3188_v61 }
 0x18b   :  { %2786 = vmatmul.mubr.f32.gmra.mrb[30].mxu1 %v815_v1 }
 0x18c   :  { %3191 = vmatpush3.bf16.msra.mxu1 %v3188_v61 }
 0x202   :  { %v2710_v17 = vpop.f32.mrb[0].mxu1 }
 0x203   :  { %v721_v18 = vpop.f32.mrb[1].mxu1 }
 0x204   :  { %935 = vmatprep.mubr.f32.mxu0 %v721_v18  ;;  %v1365_v18 = vld [vmem:[#allocation9 + $0x20] sm:$0xff] }
 0x206   :  { %v2684_v19 = vpop.f32.mrb[0].mxu0 }
 0x207   :  { %v528_v20 = vpop.f32.mrb[1].mxu0 }
 0x208   :  { %936 = vmatmul.mubr.f32.vlgmr.msra.gmra.mrb[16].mxu0 %v528_v20 }
 0x209   :  { %940 = vmatprep.mubr.f32.mxu0 %v2710_v17  ;;  %v3196_v17 = vpack.c.bf16 %v1364_v16, %v1363_v14  ;;  %3195 = vmatpush3.bf16.msra.mxu0 %v3192_v15 }
 0x20b   :  { %3197 = vmatprep.subr.bf16.mxu0 %v3196_v17 }
 0x20c   :  { %941 = vmatmul.mubr.f32.gmra.mrb[18].mxu0 %v2684_v19  ;;  %v1366_v19 = vld [vmem:[#allocation9 + $0x28] sm:$0xff] }
 0x20d   :  { %v2687_v21 = vpop.f32.mrb[2].mxu0  ;;  %v2713_v22 = vpop.f32.mrb[2].mxu1  ;;  %v3200_v20 = vpack.c.bf16 %v1366_v19, %v1365_v18  ;;  %3199 = vmatpush3.bf16.msra.mxu0 %v3196_v17 }
 0x20e   :  { %v538_v23 = vpop.f32.mrb[3].mxu0  ;;  %v731_v24 = vpop.f32.mrb[3].mxu1 }
 0x20f   :  { %945 = vmatprep.mubr.f32.mxu0 %v731_v24  ;;  %3201 = vmatprep.subr.bf16.mxu0 %v3200_v20  ;;  %v1369_v24 = vld [vmem:[#allocation9 + $0x40] sm:$0xff] }
 0x210   :  { %946 = vmatmul.mubr.f32.gmra.mrb[20].mxu0 %v538_v23 }
 0x211   :  { %950 = vmatprep.mubr.f32.mxu0 %v2713_v22  ;;  %v1368_v22 = vld [vmem:[#allocation9 + $0x38] sm:$0xff]  ;;  %3203 = vmatpush3.bf16.msra.mxu0 %v3200_v20 }
 0x214   :  { %951 = vmatmul.mubr.f32.gmra.mrb[22].mxu0 %v2687_v21  ;;  %v1367_v21 = vld [vmem:[#allocation9 + $0x30] sm:$0xff] }
 0x215   :  { %v2690_v25 = vpop.f32.mrb[4].mxu0  ;;  %v2716_v26 = vpop.f32.mrb[4].mxu1  ;;  %v3204_v23 = vpack.c.bf16 %v1368_v22, %v1367_v21 }
 0x216   :  { %v548_v27 = vpop.f32.mrb[5].mxu0  ;;  %v741_v28 = vpop.f32.mrb[5].mxu1 }
 0x217   :  { %955 = vmatprep.mubr.f32.mxu0 %v741_v28  ;;  %3205 = vmatprep.subr.bf16.mxu0 %v3204_v23  ;;  %v1372_v28 = vld [vmem:[#allocation9 + $0x58] sm:$0xff] }
 0x218   :  { %956 = vmatmul.mubr.f32.gmra.mrb[24].mxu0 %v548_v27  ;;  %v1371_v27 = vld [vmem:[#allocation9 + $0x50] sm:$0xff] }
 0x219   :  { %960 = vmatprep.mubr.f32.mxu0 %v2716_v26  ;;  %3207 = vmatpush3.bf16.msra.mxu0 %v3204_v23 }
 0x21c   :  { %961 = vmatmul.mubr.f32.gmra.mrb[26].mxu0 %v2690_v25  ;;  %v1370_v25 = vld [vmem:[#allocation9 + $0x48] sm:$0xff] }
 0x21d   :  { %v2693_v29 = vpop.f32.mrb[6].mxu0  ;;  %v2719_v30 = vpop.f32.mrb[6].mxu1  ;;  %v3208_v26 = vpack.c.bf16 %v1370_v25, %v1369_v24 }
 0x21e   :  { %v558_v31 = vpop.f32.mrb[7].mxu0  ;;  %v751_v32 = vpop.f32.mrb[7].mxu1 }
 0x21f   :  { %965 = vmatprep.mubr.f32.mxu0 %v751_v32  ;;  %3209 = vmatprep.subr.bf16.mxu0 %v3208_v26 }
 0x220   :  { %966 = vmatmul.mubr.f32.gmra.mrb[28].mxu0 %v558_v31  ;;  %v1374_v31 = vld [vmem:[#allocation9 + $0x68] sm:$0xff] }
 0x221   :  { %970 = vmatprep.mubr.f32.mxu0 %v2719_v30  ;;  %v1373_v30 = vld [vmem:[#allocation9 + $0x60] sm:$0xff]  ;;  %3211 = vmatpush3.bf16.msra.mxu0 %v3208_v26 }
 0x222   :  { %v3216_v32 = vpack.c.bf16 %v1374_v31, %v1373_v30 }
 0x224   :  { %971 = vmatmul.mubr.f32.gmra.mrb[30].mxu0 %v2693_v29  ;;  %v3212_v29 = vpack.c.bf16 %v1372_v28, %v1371_v27 }
 0x225   :  { %v2696_v33 = vpop.f32.mrb[8].mxu0  ;;  %v2722_v34 = vpop.f32.mrb[8].mxu1 }
 0x226   :  { %v568_v35 = vpop.f32.mrb[9].mxu0  ;;  %v761_v36 = vpop.f32.mrb[9].mxu1  ;;  %3213 = vmatprep.subr.bf16.mxu0 %v3212_v29 }
 0x227   :  { %975 = vmatprep.mubr.f32.mxu0 %v761_v36  ;;  %3215 = vmatpush3.bf16.msra.mxu0 %v3212_v29 }
 0x228   :  { %976 = vmatmul.mubr.f32.gmra.mrb[32].mxu0 %v568_v35  ;;  %3217 = vmatprep.subr.bf16.mxu0 %v3216_v32  ;;  %v4151_v35 = vld [vmem:[%s4436_s25] ss:$0 sm:$0xff] }
 0x229   :  { %980 = vmatprep.mubr.f32.mxu0 %v2722_v34 }
 0x22b   :  { %3219 = vmatpush3.bf16.msra.mxu0 %v3216_v32 }
 0x22c   :  { %981 = vmatmul.mubr.f32.gmra.mrb[34].mxu0 %v2696_v33 }
 0x22d   :  { %v2699_v37 = vpop.f32.mrb[10].mxu0  ;;  %v2725_v38 = vpop.f32.mrb[10].mxu1 }
 0x22e   :  { %v578_v39 = vpop.f32.mrb[11].mxu0  ;;  %v771_v42 = vpop.f32.mrb[11].mxu1 }
 0x22f   :  { %985 = vmatprep.mubr.f32.mxu0 %v771_v42 }
 0x230   :  { %986 = vmatmul.mubr.f32.gmra.mrb[36].mxu0 %v578_v39 }
 0x231   :  { %990 = vmatprep.mubr.f32.mxu0 %v2725_v38 }
 0x234   :  { %991 = vmatmul.mubr.f32.gmra.mrb[38].mxu0 %v2699_v37 }
 0x235   :  { %v2702_v43 = vpop.f32.mrb[12].mxu0  ;;  %v2728_v44 = vpop.f32.mrb[12].mxu1 }
 0x236   :  { %v588_v45 = vpop.f32.mrb[13].mxu0  ;;  %v781_v47 = vpop.f32.mrb[13].mxu1 }
 0x237   :  { %995 = vmatprep.mubr.f32.mxu0 %v781_v47 }
 0x238   :  { %996 = vmatmul.mubr.f32.gmra.mrb[40].mxu0 %v588_v45 }
 0x239   :  { %1000 = vmatprep.mubr.f32.mxu0 %v2728_v44 }
 0x23c   :  { %1001 = vmatmul.mubr.f32.gmra.mrb[42].mxu0 %v2702_v43 }
 0x23d   :  { %v2705_v41 = vpop.f32.mrb[14].mxu0  ;;  %v2731_v48 = vpop.f32.mrb[14].mxu1 }
 0x23e   :  { %v598_v49 = vpop.f32.mrb[15].mxu0  ;;  %v791_v50 = vpop.f32.mrb[15].mxu1 }
 0x23f   :  { %1005 = vmatprep.mubr.f32.mxu0 %v791_v50 }
 0x240   :  { %1006 = vmatmul.mubr.f32.gmra.mrb[44].mxu0 %v598_v49 }
 0x241   :  { %1010 = vmatprep.mubr.f32.mxu0 %v2731_v48 }
 0x242   :  { %v4116_v57 = vpop.f32.mrb[16].mxu1 }
 0x243   :  { %v4118_v58 = vpop.f32.mrb[17].mxu1 }
 0x244   :  { %1011 = vmatmul.mubr.f32.gmra.mrb[46].mxu0 %v2705_v41 }
 0x246   :  { %v4120_v62 = vpop.f32.mrb[18].mxu1 }
 0x247   :  { %v4122_v63 = vpop.f32.mrb[19].mxu1 }
 0x24a   :  { %v4124_v0 = vpop.f32.mrb[20].mxu1 }
 0x24b   :  { %v4126_v1 = vpop.f32.mrb[21].mxu1 }
 0x24e   :  { %v4128_v2 = vpop.f32.mrb[22].mxu1 }
 0x24f   :  { %v4130_v3 = vpop.f32.mrb[23].mxu1 }
 0x252   :  { %v4132_v4 = vpop.f32.mrb[24].mxu1 }
 0x253   :  { %v4134_v5 = vpop.f32.mrb[25].mxu1 }
 0x256   :  { %v4136_v6 = vpop.f32.mrb[26].mxu1 }
 0x257   :  { %v4138_v7 = vpop.f32.mrb[27].mxu1 }
 0x25a   :  { %v4140_v8 = vpop.f32.mrb[28].mxu1 }
 0x25b   :  { %v4142_v9 = vpop.f32.mrb[29].mxu1 }
 0x25e   :  { %v4144_v10 = vpop.f32.mrb[30].mxu1 }
 0x25f   :  { %v4146_v11 = vpop.f32.mrb[31].mxu1 }
 0x2db   :  { %v2401_v33 = vpop.f32.mrb[16].mxu0 }
 0x2dc   :  { %v2402_v34 = vpop.f32.mrb[17].mxu0 }
 0x2dd   :  { %v2403_v36 = vadd.f32 %v2402_v34, %v2401_v33 }
 0x2df   :  { %v2404_v37 = vpop.f32.mrb[18].mxu0  ;;  %v938_v38 = vadd.f32 %v2403_v36, %v4151_v35 }
 0x2e0   :  { %v2405_v39 = vpop.f32.mrb[19].mxu0 }
 0x2e1   :  { %v2406_v42 = vadd.f32 %v2405_v39, %v2404_v37  ;;  %v1083_v43 = vadd.f32 %v4118_v58, %v938_v38 }
 0x2e3   :  { %v943_v44 = vadd.f32 %v2406_v42, %v4151_v35  ;;  %v1161_v45 = vmax.f32 %v1083_v43, 0.0  ;;  %v2407_v47 = vpop.f32.mrb[20].mxu0 }
 0x2e4   :  { %v2408_v41 = vpop.f32.mrb[21].mxu0 }
 0x2e5   :  { %v1088_v48 = vadd.f32 %v4116_v57, %v943_v44  ;;  %v2409_v49 = vadd.f32 %v2408_v41, %v2407_v47  ;;  %2820 = vmatprep.mubr.f32.mxu1 %v1161_v45 }
 0x2e7   :  { %v1162_v50 = vmax.f32 %v1088_v48, 0.0  ;;  %v2410_v51 = vpop.f32.mrb[22].mxu0  ;;  %v948_v52 = vadd.f32 %v2409_v49, %v4151_v35 }
 0x2e8   :  { %v2411_v53 = vpop.f32.mrb[23].mxu0 }
 0x2e9   :  { %v2412_v54 = vadd.f32 %v2411_v53, %v2410_v51  ;;  %v1093_v55 = vadd.f32 %v4122_v63, %v948_v52  ;;  %2821 = vmatmul.mubr.f32.vlgmr.msra.gmra.mrb[32].mxu1 %v1162_v50 }
 0x2eb   :  { %v953_v56 = vadd.f32 %v2412_v54, %v4151_v35  ;;  %v1163_v58 = vmax.f32 %v1093_v55, 0.0  ;;  %v2413_v59 = vpop.f32.mrb[24].mxu0 }
 0x2ec   :  { %v2414_v60 = vpop.f32.mrb[25].mxu0 }
 0x2ed   :  { %v2415_v61 = vadd.f32 %v2414_v60, %v2413_v59  ;;  %2823 = vmatprep.mubr.f32.mxu1 %v1163_v58  ;;  %v1098_v57 = vadd.f32 %v4120_v62, %v953_v56 }
 0x2ef   :  { %v2416_v12 = vpop.f32.mrb[26].mxu0  ;;  %v958_v13 = vadd.f32 %v2415_v61, %v4151_v35  ;;  %v1164_v14 = vmax.f32 %v1098_v57, 0.0 }
 0x2f0   :  { %v2417_v15 = vpop.f32.mrb[27].mxu0 }
 0x2f1   :  { %v2418_v16 = vadd.f32 %v2417_v15, %v2416_v12  ;;  %v1103_v17 = vadd.f32 %v4126_v1, %v958_v13  ;;  %2824 = vmatmul.mubr.f32.gmra.mrb[34].mxu1 %v1164_v14 }
 0x2f3   :  { %v963_v63 = vadd.f32 %v2418_v16, %v4151_v35  ;;  %v1165_v18 = vmax.f32 %v1103_v17, 0.0  ;;  %v2419_v19 = vpop.f32.mrb[28].mxu0 }
 0x2f4   :  { %v2420_v20 = vpop.f32.mrb[29].mxu0 }
 0x2f5   :  { %v2421_v21 = vadd.f32 %v2420_v20, %v2419_v19  ;;  %2826 = vmatprep.mubr.f32.mxu1 %v1165_v18  ;;  %v1108_v22 = vadd.f32 %v4124_v0, %v963_v63 }
 0x2f7   :  { %v2422_v23 = vpop.f32.mrb[30].mxu0  ;;  %v968_v62 = vadd.f32 %v2421_v21, %v4151_v35  ;;  %v1166_v24 = vmax.f32 %v1108_v22, 0.0 }
 0x2f8   :  { %v2423_v25 = vpop.f32.mrb[31].mxu0 }
 0x2f9   :  { %v2424_v26 = vadd.f32 %v2423_v25, %v2422_v23  ;;  %v1113_v27 = vadd.f32 %v4130_v3, %v968_v62  ;;  %2827 = vmatmul.mubr.f32.gmra.mrb[36].mxu1 %v1166_v24  ;;  %v1375_v23 = vld [vmem:[#allocation9 + $0x70] sm:$0xff]  ;;  %v1376_v62 = vld [vmem:[#allocation9 + $0x78] sm:$0xff]  ;;  %v1545_v24 = vld [vmem:[#allocation11] sm:$0xff] }
 0x2fa   :  { %v1546_v25 = vld [vmem:[#allocation11 + $0x8] sm:$0xff] }
 0x2fb   :  { %v973_v1 = vadd.f32 %v2424_v26, %v4151_v35  ;;  %v1167_v28 = vmax.f32 %v1113_v27, 0.0  ;;  %v2425_v29 = vpop.f32.mrb[32].mxu0  ;;  %v1547_v26 = vld [vmem:[#allocation11 + $0x10] sm:$0xff]  ;;  %v3224_v27 = vpack.c.bf16 %v1546_v25, %v1545_v24 }
 0x2fc   :  { %v2426_v30 = vpop.f32.mrb[33].mxu0 }
 0x2fd   :  { %v2427_v31 = vadd.f32 %v2426_v30, %v2425_v29  ;;  %2829 = vmatprep.mubr.f32.mxu1 %v1167_v28  ;;  %v1118_v32 = vadd.f32 %v4128_v2, %v973_v1  ;;  %v1548_v1 = vld [vmem:[#allocation11 + $0x18] sm:$0xff]  ;;  %v1549_v28 = vld [vmem:[#allocation11 + $0x20] sm:$0xff]  ;;  %v1550_v29 = vld [vmem:[#allocation11 + $0x28] sm:$0xff]  ;;  %3225 = vmatprep.subr.bf16.mxu1 %v3224_v27 }
 0x2fe   :  { %3227 = vmatpush3.bf16.msra.mxu1 %v3224_v27  ;;  %v1552_v30 = vld [vmem:[#allocation11 + $0x38] sm:$0xff] }
 0x2ff   :  { %v2428_v33 = vpop.f32.mrb[34].mxu0  ;;  %v978_v0 = vadd.f32 %v2427_v31, %v4151_v35  ;;  %v1168_v34 = vmax.f32 %v1118_v32, 0.0  ;;  %v1553_v32 = vld [vmem:[#allocation11 + $0x40] sm:$0xff] }
 0x300   :  { %v2429_v36 = vpop.f32.mrb[35].mxu0 }
 0x301   :  { %v2430_v37 = vadd.f32 %v2429_v36, %v2428_v33  ;;  %v1123_v38 = vadd.f32 %v4134_v5, %v978_v0  ;;  %2830 = vmatmul.mubr.f32.gmra.mrb[38].mxu1 %v1168_v34  ;;  %v1554_v33 = vld [vmem:[#allocation11 + $0x48] sm:$0xff]  ;;  %v1555_v34 = vld [vmem:[#allocation11 + $0x50] sm:$0xff]  ;;  %v1556_v36 = vld [vmem:[#allocation11 + $0x58] sm:$0xff] }
 0x302   :  { %v3240_v0 = vpack.c.bf16 %v1554_v33, %v1553_v32 }
 0x303   :  { %v983_v3 = vadd.f32 %v2430_v37, %v4151_v35  ;;  %v1169_v39 = vmax.f32 %v1123_v38, 0.0  ;;  %v2431_v42 = vpop.f32.mrb[36].mxu0  ;;  %v3244_v37 = vpack.c.bf16 %v1556_v36, %v1555_v34  ;;  %v1557_v38 = vld [vmem:[#allocation11 + $0x60] sm:$0xff] }
 0x304   :  { %v2432_v43 = vpop.f32.mrb[37].mxu0 }
 0x305   :  { %v2433_v44 = vadd.f32 %v2432_v43, %v2431_v42  ;;  %2832 = vmatprep.mubr.f32.mxu1 %v1169_v39  ;;  %v1128_v45 = vadd.f32 %v4132_v4, %v983_v3  ;;  %v1558_v3 = vld [vmem:[#allocation11 + $0x68] sm:$0xff]  ;;  %v2325_v42 = vld [vmem:[%s4402_s8] ss:$0 sm:$0xff] }
 0x306   :  { %v3248_v39 = vpack.c.bf16 %v1558_v3, %v1557_v38 }
 0x307   :  { %v2434_v47 = vpop.f32.mrb[38].mxu0  ;;  %v988_v2 = vadd.f32 %v2433_v44, %v4151_v35  ;;  %v1170_v41 = vmax.f32 %v1128_v45, 0.0 }
 0x308   :  { %v2435_v48 = vpop.f32.mrb[39].mxu0 }
 0x309   :  { %v2436_v49 = vadd.f32 %v2435_v48, %v2434_v47  ;;  %v1133_v50 = vadd.f32 %v4138_v7, %v988_v2  ;;  %2833 = vmatmul.mubr.f32.gmra.mrb[40].mxu1 %v1170_v41 }
 0x30b   :  { %v993_v5 = vadd.f32 %v2436_v49, %v4151_v35  ;;  %v1171_v51 = vmax.f32 %v1133_v50, 0.0  ;;  %v2437_v52 = vpop.f32.mrb[40].mxu0 }
 0x30c   :  { %v2438_v53 = vpop.f32.mrb[41].mxu0 }
 0x30d   :  { %v2439_v54 = vadd.f32 %v2438_v53, %v2437_v52  ;;  %2835 = vmatprep.mubr.f32.mxu1 %v1171_v51  ;;  %v1138_v55 = vadd.f32 %v4136_v6, %v993_v5 }
 0x30f   :  { %v2440_v56 = vpop.f32.mrb[42].mxu0  ;;  %v998_v4 = vadd.f32 %v2439_v54, %v4151_v35  ;;  %v1172_v58 = vmax.f32 %v1138_v55, 0.0 }
 0x310   :  { %v2441_v59 = vpop.f32.mrb[43].mxu0 }
 0x311   :  { %v2442_v60 = vadd.f32 %v2441_v59, %v2440_v56  ;;  %v1143_v61 = vadd.f32 %v4142_v9, %v998_v4  ;;  %2836 = vmatmul.mubr.f32.gmra.mrb[42].mxu1 %v1172_v58 }
 0x313   :  { %v1003_v7 = vadd.f32 %v2442_v60, %v4151_v35  ;;  %v1173_v57 = vmax.f32 %v1143_v61, 0.0  ;;  %v2443_v12 = vpop.f32.mrb[44].mxu0 }
 0x314   :  { %v2444_v13 = vpop.f32.mrb[45].mxu0 }
 0x315   :  { %v2445_v14 = vadd.f32 %v2444_v13, %v2443_v12  ;;  %2838 = vmatprep.mubr.f32.mxu1 %v1173_v57  ;;  %v1148_v15 = vadd.f32 %v4140_v8, %v1003_v7  ;;  %v3220_v8 = vpack.c.bf16 %v1376_v62, %v1375_v23 }
 0x317   :  { %v2446_v16 = vpop.f32.mrb[46].mxu0  ;;  %v1008_v6 = vadd.f32 %v2445_v14, %v4151_v35  ;;  %v1174_v17 = vmax.f32 %v1148_v15, 0.0  ;;  %3221 = vmatprep.subr.bf16.mxu0 %v3220_v8 }
 0x318   :  { %v2447_v63 = vpop.f32.mrb[47].mxu0  ;;  %3223 = vmatpush3.bf16.msra.mxu0 %v3220_v8 }
 0x319   :  { %v2448_v18 = vadd.f32 %v2447_v63, %v2446_v16  ;;  %v1153_v19 = vadd.f32 %v4146_v11, %v1008_v6  ;;  %2839 = vmatmul.mubr.f32.gmra.mrb[44].mxu1 %v1174_v17  ;;  %v3228_v11 = vpack.c.bf16 %v1548_v1, %v1547_v26 }
 0x31b   :  { %v1013_v9 = vadd.f32 %v2448_v18, %v4151_v35  ;;  %v1175_v20 = vmax.f32 %v1153_v19, 0.0  ;;  %3229 = vmatprep.subr.bf16.mxu1 %v3228_v11  ;;  %v3232_v35 = vpack.c.bf16 %v1550_v29, %v1549_v28 }
 0x31c   :  { %3231 = vmatpush3.bf16.msra.mxu1 %v3228_v11 }
 0x31d   :  { %2841 = vmatprep.mubr.f32.mxu1 %v1175_v20  ;;  %v1158_v21 = vadd.f32 %v4144_v10, %v1013_v9  ;;  %v1551_v10 = vld [vmem:[#allocation11 + $0x30] sm:$0xff]  ;;  %3233 = vmatprep.subr.bf16.mxu1 %v3232_v35 }
 0x31e   :  { %v3236_v31 = vpack.c.bf16 %v1552_v30, %v1551_v10  ;;  %v1560_v10 = vld [vmem:[#allocation11 + $0x78] sm:$0xff] }
 0x31f   :  { %v1176_v22 = vmax.f32 %v1158_v21, 0.0 }
 0x320   :  { %3235 = vmatpush3.bf16.msra.mxu1 %v3232_v35  ;;  %v1559_v35 = vld [vmem:[#allocation11 + $0x70] sm:$0xff] }
 0x321   :  { %2842 = vmatmul.mubr.f32.gmra.mrb[46].mxu1 %v1176_v22  ;;  %3237 = vmatprep.subr.bf16.mxu1 %v3236_v31  ;;  %v3252_v30 = vpack.c.bf16 %v1560_v10, %v1559_v35  ;;  %v1834_v10 = vld [vmem:[%s4407_s13 + $0x10] sm:$0xff] }
 0x324   :  { %3239 = vmatpush3.bf16.msra.mxu1 %v3236_v31  ;;  %v2326_v31 = vld [vmem:[%s4404_s10] ss:$0 sm:$0xff] }
 0x325   :  { %3241 = vmatprep.subr.bf16.mxu1 %v3240_v0 }
 0x328   :  { %3243 = vmatpush3.bf16.msra.mxu1 %v3240_v0 }
 0x329   :  { %3245 = vmatprep.subr.bf16.mxu1 %v3244_v37 }
 0x32c   :  { %3247 = vmatpush3.bf16.msra.mxu1 %v3244_v37 }
 0x32d   :  { %3249 = vmatprep.subr.bf16.mxu1 %v3248_v39 }
 0x330   :  { %3251 = vmatpush3.bf16.msra.mxu1 %v3248_v39 }
 0x331   :  { %3253 = vmatprep.subr.bf16.mxu1 %v3252_v30 }
 0x334   :  { %3255 = vmatpush3.bf16.msra.mxu1 %v3252_v30  ;;  %v1835_v30 = vld [vmem:[%s4407_s13 + $0x18] sm:$0xff] }
 0x3bc   :  { %v2822_v43 = vpop.f32.mrb[32].mxu1 }
 0x3bd   :  { %v1272_v44 = vadd.f32 %v2822_v43, %v2325_v42  ;;  %v1266_v45 = vpop.f32.mrb[33].mxu1 }
 0x3be   :  { %v1267_v47 = vadd.f32 %v2325_v42, %v1266_v45 }
 0x3bf   :  { %v1346_v41 = vmax.f32 %v1272_v44, 0.0 }
 0x3c0   :  { %v1345_v2 = vmax.f32 %v1267_v47, 0.0 }
 0x3c2   :  { %2876 = vmatprep.mubr.f32.mxu0 %v1345_v2 }
 0x3c3   :  { %2877 = vmatmul.mubr.f32.vlgmr.msra.gmra.mrb[48].mxu0 %v1346_v41 }
 0x3c4   :  { %v2825_v48 = vpop.f32.mrb[34].mxu1 }
 0x3c5   :  { %v1282_v49 = vadd.f32 %v2825_v48, %v2325_v42  ;;  %v1276_v50 = vpop.f32.mrb[35].mxu1 }
 0x3c6   :  { %v1277_v5 = vadd.f32 %v2325_v42, %v1276_v50 }
 0x3c7   :  { %v1348_v52 = vmax.f32 %v1282_v49, 0.0 }
 0x3c8   :  { %v1347_v51 = vmax.f32 %v1277_v5, 0.0 }
 0x3ca   :  { %2879 = vmatprep.mubr.f32.mxu0 %v1347_v51 }
 0x3cb   :  { %2880 = vmatmul.mubr.f32.gmra.mrb[50].mxu0 %v1348_v52 }
 0x3cc   :  { %v2828_v53 = vpop.f32.mrb[36].mxu1 }
 0x3cd   :  { %v1292_v54 = vadd.f32 %v2828_v53, %v2325_v42  ;;  %v1286_v55 = vpop.f32.mrb[37].mxu1 }
 0x3ce   :  { %v1287_v56 = vadd.f32 %v2325_v42, %v1286_v55 }
 0x3cf   :  { %v1350_v58 = vmax.f32 %v1292_v54, 0.0 }
 0x3d0   :  { %v1349_v4 = vmax.f32 %v1287_v56, 0.0 }
 0x3d2   :  { %2882 = vmatprep.mubr.f32.mxu0 %v1349_v4 }
 0x3d3   :  { %2883 = vmatmul.mubr.f32.gmra.mrb[52].mxu0 %v1350_v58 }
 0x3d4   :  { %v2831_v59 = vpop.f32.mrb[38].mxu1 }
 0x3d5   :  { %v1302_v60 = vadd.f32 %v2831_v59, %v2325_v42  ;;  %v1296_v61 = vpop.f32.mrb[39].mxu1 }
 0x3d6   :  { %v1297_v7 = vadd.f32 %v2325_v42, %v1296_v61 }
 0x3d7   :  { %v1352_v12 = vmax.f32 %v1302_v60, 0.0 }
 0x3d8   :  { %v1351_v57 = vmax.f32 %v1297_v7, 0.0 }
 0x3da   :  { %2885 = vmatprep.mubr.f32.mxu0 %v1351_v57 }
 0x3db   :  { %2886 = vmatmul.mubr.f32.gmra.mrb[54].mxu0 %v1352_v12 }
 0x3dc   :  { %v2834_v13 = vpop.f32.mrb[40].mxu1 }
 0x3dd   :  { %v1312_v14 = vadd.f32 %v2834_v13, %v2325_v42  ;;  %v1306_v15 = vpop.f32.mrb[41].mxu1 }
 0x3de   :  { %v1307_v16 = vadd.f32 %v2325_v42, %v1306_v15 }
 0x3df   :  { %v1354_v17 = vmax.f32 %v1312_v14, 0.0 }
 0x3e0   :  { %v1353_v6 = vmax.f32 %v1307_v16, 0.0 }
 0x3e2   :  { %2888 = vmatprep.mubr.f32.mxu0 %v1353_v6 }
 0x3e3   :  { %2889 = vmatmul.mubr.f32.gmra.mrb[56].mxu0 %v1354_v17 }
 0x3e4   :  { %v2837_v63 = vpop.f32.mrb[42].mxu1 }
 0x3e5   :  { %v1322_v18 = vadd.f32 %v2837_v63, %v2325_v42  ;;  %v1316_v19 = vpop.f32.mrb[43].mxu1 }
 0x3e6   :  { %v1317_v9 = vadd.f32 %v2325_v42, %v1316_v19 }
 0x3e7   :  { %v1356_v21 = vmax.f32 %v1322_v18, 0.0 }
 0x3e8   :  { %v1355_v20 = vmax.f32 %v1317_v9, 0.0 }
 0x3ea   :  { %2891 = vmatprep.mubr.f32.mxu0 %v1355_v20 }
 0x3eb   :  { %2892 = vmatmul.mubr.f32.gmra.mrb[58].mxu0 %v1356_v21 }
 0x3ec   :  { %v2840_v22 = vpop.f32.mrb[44].mxu1 }
 0x3ed   :  { %v1332_v23 = vadd.f32 %v2840_v22, %v2325_v42  ;;  %v1326_v62 = vpop.f32.mrb[45].mxu1 }
 0x3ee   :  { %v1327_v8 = vadd.f32 %v2325_v42, %v1326_v62  ;;  %v3403_v62 = vld [vmem:[%s4435_s15] sm:$0xff]  ;;  %s3653_s15 = smov [#allocation18]  }
 0x3ef   :  { %v1358_v25 = vmax.f32 %v1332_v23, 0.0 }
 0x3f0   :  { %v1357_v24 = vmax.f32 %v1327_v8, 0.0  ;;  %v3650_v8 = vmov 0.0|0.0  }
 0x3f1   :  { %3256 = vmatprep.subr.bf16.mxu0 %v3650_v8 }
 0x3f2   :  { %2894 = vmatprep.mubr.f32.mxu0 %v1357_v24  ;;  %v1848_v24 = vld [vmem:[%s4407_s13 + $0x80] sm:$0xff] }
 0x3f3   :  { %2895 = vmatmul.mubr.f32.gmra.mrb[60].mxu0 %v1358_v25  ;;  %v1849_v25 = vld [vmem:[%s4407_s13 + $0x88] sm:$0xff] }
 0x3f4   :  { %v2843_v26 = vpop.f32.mrb[46].mxu1 }
 0x3f5   :  { %v1342_v27 = vadd.f32 %v2843_v26, %v2325_v42  ;;  %v1336_v1 = vpop.f32.mrb[47].mxu1  ;;  %v1832_v26 = vld [vmem:[%s4407_s13] sm:$0xff] }
 0x3f6   :  { %v1337_v11 = vadd.f32 %v2325_v42, %v1336_v1  ;;  %v1833_v1 = vld [vmem:[%s4407_s13 + $0x8] sm:$0xff] }
 0x3f7   :  { %v1360_v29 = vmax.f32 %v1342_v27, 0.0  ;;  %v3280_v27 = vpack.c.bf16 %v1849_v25, %v1848_v24 }
 0x3f8   :  { %v1359_v28 = vmax.f32 %v1337_v11, 0.0  ;;  %v1850_v11 = vld [vmem:[%s4407_s13 + $0x90] sm:$0xff] }
 0x3f9   :  { %3281 = vmatprep.subr.bf16.mxu1 %v3280_v27 }
 0x3fa   :  { %2897 = vmatprep.mubr.f32.mxu0 %v1359_v28  ;;  %v1851_v28 = vld [vmem:[%s4407_s13 + $0x98] sm:$0xff] }
 0x3fb   :  { %2898 = vmatmul.mubr.f32.gmra.mrb[62].mxu0 %v1360_v29  ;;  %v3282_v29 = vpack.c.bf16 %v1833_v1, %v1832_v26  ;;  %v3284_v35 = vpack.c.bf16 %v1851_v28, %v1850_v11 }
 0x3fc   :  { %2988 = vmatprep.mubr.msk.f32.mxu0 %vm3651_vm0, %v3649_v46 }
 0x496   :  { %v2878_v32 = vpop.f32.mrb[48].mxu0 }
 0x497   :  { %v1456_v33 = vadd.f32 %v2878_v32, %v2326_v31  ;;  %v1450_v0 = vpop.f32.mrb[49].mxu0  ;;  %v1853_v32 = vld [vmem:[%s4407_s13 + $0xa8] sm:$0xff] }
 0x498   :  { %v1451_v34 = vadd.f32 %v2326_v31, %v1450_v0 }
 0x499   :  { %v1530_v37 = vmax.f32 %v1456_v33, 0.0  ;;  %v3286_v33 = vpack.c.bf16 %v1835_v30, %v1834_v10 }
 0x49a   :  { %v1529_v36 = vmax.f32 %v1451_v34, 0.0  ;;  %v1836_v34 = vld [vmem:[%s4407_s13 + $0x20] sm:$0xff] }
 0x49c   :  { %2932 = vmatprep.mubr.f32.mxu1 %v1529_v36  ;;  %v1837_v36 = vld [vmem:[%s4407_s13 + $0x28] sm:$0xff] }
 0x49d   :  { %2933 = vmatmul.mubr.f32.vlgmr.msra.gmra.mrb[48].mxu1 %v1530_v37  ;;  %v1854_v37 = vld [vmem:[%s4407_s13 + $0xb0] sm:$0xff] }
 0x49e   :  { %v2881_v38 = vpop.f32.mrb[50].mxu0  ;;  %3283 = vmatpush3.bf16.msra.mxu1 %v3282_v29 }
 0x49f   :  { %v1466_v3 = vadd.f32 %v2881_v38, %v2326_v31  ;;  %v1460_v39 = vpop.f32.mrb[51].mxu0  ;;  %3285 = vmatprep.subr.bf16.mxu1 %v3284_v35  ;;  %v1855_v38 = vld [vmem:[%s4407_s13 + $0xb8] sm:$0xff] }
 0x4a0   :  { %v1461_v42 = vadd.f32 %v2326_v31, %v1460_v39  ;;  %v3292_v39 = vpack.c.bf16 %v1855_v38, %v1854_v37 }
 0x4a1   :  { %v1532_v44 = vmax.f32 %v1466_v3, 0.0  ;;  %v3290_v3 = vpack.c.bf16 %v1837_v36, %v1836_v34 }
 0x4a2   :  { %v1531_v43 = vmax.f32 %v1461_v42, 0.0  ;;  %3287 = vmatpush3.bf16.msra.mxu1 %v3286_v33  ;;  %v1838_v42 = vld [vmem:[%s4407_s13 + $0x30] sm:$0xff] }
 0x4a4   :  { %2935 = vmatprep.mubr.f32.mxu1 %v1531_v43  ;;  %v1839_v43 = vld [vmem:[%s4407_s13 + $0x38] sm:$0xff] }
 0x4a5   :  { %2936 = vmatmul.mubr.f32.gmra.mrb[50].mxu1 %v1532_v44  ;;  %v1856_v44 = vld [vmem:[%s4407_s13 + $0xc0] sm:$0xff] }
 0x4a6   :  { %v2884_v45 = vpop.f32.mrb[52].mxu0 }
 0x4a7   :  { %v1476_v47 = vadd.f32 %v2884_v45, %v2326_v31  ;;  %v1470_v2 = vpop.f32.mrb[53].mxu0  ;;  %v1857_v45 = vld [vmem:[%s4407_s13 + $0xc8] sm:$0xff] }
 0x4a8   :  { %v1471_v41 = vadd.f32 %v2326_v31, %v1470_v2  ;;  %v3296_v2 = vpack.c.bf16 %v1857_v45, %v1856_v44 }
 0x4a9   :  { %v1534_v49 = vmax.f32 %v1476_v47, 0.0  ;;  %v3294_v47 = vpack.c.bf16 %v1839_v43, %v1838_v42 }
 0x4aa   :  { %v1533_v48 = vmax.f32 %v1471_v41, 0.0  ;;  %v1840_v41 = vld [vmem:[%s4407_s13 + $0x40] sm:$0xff] }
 0x4ac   :  { %2938 = vmatprep.mubr.f32.mxu1 %v1533_v48  ;;  %v1841_v48 = vld [vmem:[%s4407_s13 + $0x48] sm:$0xff] }
 0x4ad   :  { %2939 = vmatmul.mubr.f32.gmra.mrb[52].mxu1 %v1534_v49  ;;  %v1858_v49 = vld [vmem:[%s4407_s13 + $0xd0] sm:$0xff] }
 0x4ae   :  { %v2887_v50 = vpop.f32.mrb[54].mxu0 }
 0x4af   :  { %v1486_v5 = vadd.f32 %v2887_v50, %v2326_v31  ;;  %v1480_v51 = vpop.f32.mrb[55].mxu0  ;;  %v1859_v50 = vld [vmem:[%s4407_s13 + $0xd8] sm:$0xff] }
 0x4b0   :  { %v1481_v52 = vadd.f32 %v2326_v31, %v1480_v51  ;;  %v3300_v51 = vpack.c.bf16 %v1859_v50, %v1858_v49 }
 0x4b1   :  { %v1536_v54 = vmax.f32 %v1486_v5, 0.0  ;;  %v3298_v5 = vpack.c.bf16 %v1841_v48, %v1840_v41 }
 0x4b2   :  { %v1535_v53 = vmax.f32 %v1481_v52, 0.0  ;;  %v1842_v52 = vld [vmem:[%s4407_s13 + $0x50] sm:$0xff] }
 0x4b4   :  { %2941 = vmatprep.mubr.f32.mxu1 %v1535_v53  ;;  %v1843_v53 = vld [vmem:[%s4407_s13 + $0x58] sm:$0xff] }
 0x4b5   :  { %2942 = vmatmul.mubr.f32.gmra.mrb[54].mxu1 %v1536_v54  ;;  %v1860_v54 = vld [vmem:[%s4407_s13 + $0xe0] sm:$0xff] }
 0x4b6   :  { %v2890_v55 = vpop.f32.mrb[56].mxu0 }
 0x4b7   :  { %v1496_v56 = vadd.f32 %v2890_v55, %v2326_v31  ;;  %v1490_v4 = vpop.f32.mrb[57].mxu0  ;;  %v1861_v55 = vld [vmem:[%s4407_s13 + $0xe8] sm:$0xff] }
 0x4b8   :  { %v1491_v58 = vadd.f32 %v2326_v31, %v1490_v4  ;;  %v3304_v4 = vpack.c.bf16 %v1861_v55, %v1860_v54 }
 0x4b9   :  { %v1538_v60 = vmax.f32 %v1496_v56, 0.0  ;;  %v3302_v56 = vpack.c.bf16 %v1843_v53, %v1842_v52 }
 0x4ba   :  { %v1537_v59 = vmax.f32 %v1491_v58, 0.0  ;;  %v1844_v58 = vld [vmem:[%s4407_s13 + $0x60] sm:$0xff] }
 0x4bc   :  { %2944 = vmatprep.mubr.f32.mxu1 %v1537_v59  ;;  %v1845_v59 = vld [vmem:[%s4407_s13 + $0x68] sm:$0xff] }
 0x4bd   :  { %2945 = vmatmul.mubr.f32.gmra.mrb[56].mxu1 %v1538_v60  ;;  %v1862_v60 = vld [vmem:[%s4407_s13 + $0xf0] sm:$0xff] }
 0x4be   :  { %v2893_v61 = vpop.f32.mrb[58].mxu0 }
 0x4bf   :  { %v1506_v7 = vadd.f32 %v2893_v61, %v2326_v31  ;;  %v1500_v57 = vpop.f32.mrb[59].mxu0  ;;  %v1863_v61 = vld [vmem:[%s4407_s13 + $0xf8] sm:$0xff] }
 0x4c0   :  { %v1501_v12 = vadd.f32 %v2326_v31, %v1500_v57  ;;  %v3308_v57 = vpack.c.bf16 %v1863_v61, %v1862_v60 }
 0x4c1   :  { %v1540_v14 = vmax.f32 %v1506_v7, 0.0  ;;  %v3306_v7 = vpack.c.bf16 %v1845_v59, %v1844_v58 }
 0x4c2   :  { %v1539_v13 = vmax.f32 %v1501_v12, 0.0  ;;  %v1846_v12 = vld [vmem:[%s4407_s13 + $0x70] sm:$0xff] }
 0x4c4   :  { %2947 = vmatprep.mubr.f32.mxu1 %v1539_v13  ;;  %v1847_v13 = vld [vmem:[%s4407_s13 + $0x78] sm:$0xff] }
 0x4c5   :  { %2948 = vmatmul.mubr.f32.gmra.mrb[58].mxu1 %v1540_v14  ;;  %v3310_v14 = vpack.c.bf16 %v1847_v13, %v1846_v12  ;;  %v3652_v13 = vmov 1.0  }
 0x4c6   :  { %v2896_v15 = vpop.f32.mrb[60].mxu0 }
 0x4c7   :  { %v1516_v16 = vadd.f32 %v2896_v15, %v2326_v31  ;;  %v1510_v6 = vpop.f32.mrb[61].mxu0  ;;  %v4297_v15 = vld [vmem:[%s4406_s12] ss:$0 sm:$0xff] }
 0x4c8   :  { %v1511_v17 = vadd.f32 %v2326_v31, %v1510_v6 }
 0x4c9   :  { %v1542_v18 = vmax.f32 %v1516_v16, 0.0 }
 0x4ca   :  { %v1541_v63 = vmax.f32 %v1511_v17, 0.0 }
 0x4cc   :  { %2950 = vmatprep.mubr.f32.mxu1 %v1541_v63 }
 0x4cd   :  { %2951 = vmatmul.mubr.f32.gmra.mrb[60].mxu1 %v1542_v18 }
 0x4ce   :  { %v2899_v19 = vpop.f32.mrb[62].mxu0 }
 0x4cf   :  { %v1526_v9 = vadd.f32 %v2899_v19, %v2326_v31  ;;  %v1520_v20 = vpop.f32.mrb[63].mxu0 }
 0x4d0   :  { %v1521_v21 = vadd.f32 %v2326_v31, %v1520_v20  ;;  %v1852_v31 = vld [vmem:[%s4407_s13 + $0xa0] sm:$0xff] }
 0x4d1   :  { %v1544_v23 = vmax.f32 %v1526_v9, 0.0  ;;  %v3288_v0 = vpack.c.bf16 %v1853_v32, %v1852_v31 }
 0x4d2   :  { %v1543_v22 = vmax.f32 %v1521_v21, 0.0 }
 0x4d3   :  { %3289 = vmatprep.subr.bf16.mxu1 %v3288_v0 }
 0x4d4   :  { %2953 = vmatprep.mubr.f32.mxu1 %v1543_v22  ;;  %3291 = vmatpush3.bf16.msra.mxu1 %v3290_v3 }
 0x4d5   :  { %2954 = vmatmul.mubr.f32.gmra.mrb[62].mxu1 %v1544_v23  ;;  %3293 = vmatprep.subr.bf16.mxu1 %v3292_v39 }
 0x4d6   :  { %1935 = vmatprep.mubr.f32.mxu1 %v3403_v62 }
 0x4d8   :  { %3295 = vmatpush3.bf16.msra.mxu1 %v3294_v47 }
 0x4d9   :  { %3297 = vmatprep.subr.bf16.mxu1 %v3296_v2 }
 0x4dc   :  { %3299 = vmatpush3.bf16.msra.mxu1 %v3298_v5 }
 0x4dd   :  { %3301 = vmatprep.subr.bf16.mxu1 %v3300_v51 }
 0x4e0   :  { %3303 = vmatpush3.bf16.msra.mxu1 %v3302_v56 }
 0x4e1   :  { %3305 = vmatprep.subr.bf16.mxu1 %v3304_v4 }
 0x4e4   :  { %3307 = vmatpush3.bf16.msra.mxu1 %v3306_v7  ;;  %v1747_v7 = vshrl.u32 %v219_v40, 7 }
 0x4e5   :  { %3309 = vmatprep.subr.bf16.mxu1 %v3308_v57  ;;  %v2328_v57 = vld [vmem:[%s4437_s23] ss:$0 sm:$0xff] }
 0x4e6   :  { %vm1752_vm3 = vcmp.eq.s32.totalorder %v1747_v7, %v2328_v57  ;;  %v2132_v7 = vld [vmem:[#allocation15 + $0x10] sm:$0xff] }
 0x4e8   :  { %3311 = vmatpush3.bf16.msra.mxu1 %v3310_v14  ;;  %v1942_v14 = vld [vmem:[#allocation12] sm:$0xff] }
 0x4e9   :  { %3336 = vmatprep.subr.bf16.mxu1 %v3650_v8 }
 0x570   :  { %v2934_v16 = vpop.f32.mrb[48].mxu1 }
 0x571   :  { %v1640_v6 = vadd.f32 %v2934_v16, %v4297_v15  ;;  %v1634_v17 = vpop.f32.mrb[49].mxu1  ;;  %v1944_v16 = vld [vmem:[#allocation12 + $0x10] sm:$0xff] }
 0x572   :  { %v1635_v63 = vadd.f32 %v4297_v15, %v1634_v17 }
 0x573   :  { %v1714_v18 = vmax.f32 %v1640_v6, 0.0  ;;  %v1945_v6 = vld [vmem:[#allocation12 + $0x18] sm:$0xff] }
 0x574   :  { %v1713_v19 = vmax.f32 %v1635_v63, 0.0  ;;  %v3316_v17 = vpack.c.bf16 %v1945_v6, %v1944_v16  ;;  %v1946_v63 = vld [vmem:[#allocation12 + $0x20] sm:$0xff] }
 0x575   :  { %1730 = vst [vmem:[#allocation18 + $0x8] sm:$0xff] %v1714_v18 }
 0x576   :  { %1729 = vst [vmem:[#allocation18] sm:$0xff] %v1713_v19  ;;  %v3257_v9 = vpack.c.bf16 %v1714_v18, %v1713_v19  ;;  %v1947_v18 = vld [vmem:[#allocation12 + $0x28] sm:$0xff] }
 0x577   :  { %v3319_v19 = vpack.c.bf16 %v1947_v18, %v1946_v63  ;;  %v2139_v63 = vld [vmem:[#allocation15 + $0x48] sm:$0xff] }
 0x578   :  { %v2937_v20 = vpop.f32.mrb[50].mxu1  ;;  %3258 = vmatpush3.bf16.msra.mxu0 %v3257_v9  ;;  %v1948_v9 = vld [vmem:[#allocation12 + $0x30] sm:$0xff] }
 0x579   :  { %v1650_v21 = vadd.f32 %v2937_v20, %v4297_v15  ;;  %v1644_v22 = vpop.f32.mrb[51].mxu1  ;;  %3259 = vmatprep.subr.bf16.mxu0 %v3650_v8  ;;  %v1949_v20 = vld [vmem:[#allocation12 + $0x38] sm:$0xff] }
 0x57a   :  { %v1645_v23 = vadd.f32 %v4297_v15, %v1644_v22  ;;  %v1950_v22 = vld [vmem:[#allocation12 + $0x40] sm:$0xff] }
 0x57b   :  { %v1716_v62 = vmax.f32 %v1650_v21, 0.0  ;;  %v3322_v21 = vpack.c.bf16 %v1949_v20, %v1948_v9  ;;  %v2141_v9 = vld [vmem:[#allocation15 + $0x58] sm:$0xff] }
 0x57c   :  { %v1715_v24 = vmax.f32 %v1645_v23, 0.0  ;;  %v1951_v23 = vld [vmem:[#allocation12 + $0x48] sm:$0xff] }
 0x57d   :  { %1732 = vst [vmem:[#allocation18 + $0x18] sm:$0xff] %v1716_v62 }
 0x57e   :  { %1731 = vst [vmem:[#allocation18 + $0x10] sm:$0xff] %v1715_v24  ;;  %v3260_v25 = vpack.c.bf16 %v1716_v62, %v1715_v24  ;;  %v3325_v62 = vpack.c.bf16 %v1951_v23, %v1950_v22  ;;  %v1952_v24 = vld [vmem:[#allocation12 + $0x50] sm:$0xff]  ;;  %v2143_v22 = vld [vmem:[#allocation15 + $0x68] sm:$0xff] }
 0x580   :  { %v2940_v26 = vpop.f32.mrb[52].mxu1  ;;  %3261 = vmatpush3.bf16.msra.mxu0 %v3260_v25  ;;  %v1953_v25 = vld [vmem:[#allocation12 + $0x58] sm:$0xff] }
 0x581   :  { %v1660_v27 = vadd.f32 %v2940_v26, %v4297_v15  ;;  %v1654_v1 = vpop.f32.mrb[53].mxu1  ;;  %3262 = vmatprep.subr.bf16.mxu0 %v3650_v8  ;;  %v3328_v26 = vpack.c.bf16 %v1953_v25, %v1952_v24 }
 0x582   :  { %v1655_v11 = vadd.f32 %v4297_v15, %v1654_v1 }
 0x583   :  { %v1718_v28 = vmax.f32 %v1660_v27, 0.0 }
 0x584   :  { %v1717_v29 = vmax.f32 %v1655_v11, 0.0  ;;  %v1954_v11 = vld [vmem:[#allocation12 + $0x60] sm:$0xff] }
 0x585   :  { %1734 = vst [vmem:[#allocation18 + $0x28] sm:$0xff] %v1718_v28 }
 0x586   :  { %1733 = vst [vmem:[#allocation18 + $0x20] sm:$0xff] %v1717_v29  ;;  %v3263_v35 = vpack.c.bf16 %v1718_v28, %v1717_v29  ;;  %v1955_v28 = vld [vmem:[#allocation12 + $0x68] sm:$0xff] }
 0x587   :  { %v3331_v29 = vpack.c.bf16 %v1955_v28, %v1954_v11  ;;  %v2145_v11 = vld [vmem:[#allocation15 + $0x78] sm:$0xff] }
 0x588   :  { %v2943_v10 = vpop.f32.mrb[54].mxu1  ;;  %3264 = vmatpush3.bf16.msra.mxu0 %v3263_v35  ;;  %v1956_v35 = vld [vmem:[#allocation12 + $0x70] sm:$0xff] }
 0x589   :  { %v1670_v30 = vadd.f32 %v2943_v10, %v4297_v15  ;;  %v1664_v31 = vpop.f32.mrb[55].mxu1  ;;  %3265 = vmatprep.subr.bf16.mxu0 %v3650_v8  ;;  %v1957_v10 = vld [vmem:[#allocation12 + $0x78] sm:$0xff] }
 0x58a   :  { %v1665_v32 = vadd.f32 %v4297_v15, %v1664_v31  ;;  %v2036_v31 = vld [vmem:[#allocation14] sm:$0xff] }
 0x58b   :  { %v1720_v33 = vmax.f32 %v1670_v30, 0.0  ;;  %v3334_v30 = vpack.c.bf16 %v1957_v10, %v1956_v35 }
 0x58c   :  { %v1719_v0 = vmax.f32 %v1665_v32, 0.0  ;;  %v2037_v32 = vld [vmem:[#allocation14 + $0x8] sm:$0xff] }
 0x58d   :  { %1736 = vst [vmem:[#allocation18 + $0x38] sm:$0xff] %v1720_v33 }
 0x58e   :  { %1735 = vst [vmem:[#allocation18 + $0x30] sm:$0xff] %v1719_v0  ;;  %v3266_v34 = vpack.c.bf16 %v1720_v33, %v1719_v0  ;;  %v2038_v33 = vld [vmem:[#allocation14 + $0x10] sm:$0xff]  ;;  %v3337_v0 = vpack.c.bf16 %v2037_v32, %v2036_v31 }
 0x590   :  { %v2946_v36 = vpop.f32.mrb[56].mxu1  ;;  %3267 = vmatpush3.bf16.msra.mxu0 %v3266_v34  ;;  %v2039_v34 = vld [vmem:[#allocation14 + $0x18] sm:$0xff] }
 0x591   :  { %v1680_v37 = vadd.f32 %v2946_v36, %v4297_v15  ;;  %v1674_v38 = vpop.f32.mrb[57].mxu1  ;;  %3268 = vmatprep.subr.bf16.mxu0 %v3650_v8  ;;  %v3340_v36 = vpack.c.bf16 %v2039_v34, %v2038_v33 }
 0x592   :  { %v1675_v3 = vadd.f32 %v4297_v15, %v1674_v38  ;;  %v2041_v38 = vld [vmem:[#allocation14 + $0x28] sm:$0xff] }
 0x593   :  { %v1722_v39 = vmax.f32 %v1680_v37, 0.0  ;;  %v2040_v37 = vld [vmem:[#allocation14 + $0x20] sm:$0xff] }
 0x594   :  { %v1721_v42 = vmax.f32 %v1675_v3, 0.0  ;;  %v3343_v3 = vpack.c.bf16 %v2041_v38, %v2040_v37 }
 0x595   :  { %1738 = vst [vmem:[#allocation18 + $0x48] sm:$0xff] %v1722_v39 }
 0x596   :  { %1737 = vst [vmem:[#allocation18 + $0x40] sm:$0xff] %v1721_v42  ;;  %v3269_v43 = vpack.c.bf16 %v1722_v39, %v1721_v42  ;;  %v2042_v39 = vld [vmem:[#allocation14 + $0x30] sm:$0xff]  ;;  %v2043_v42 = vld [vmem:[#allocation14 + $0x38] sm:$0xff] }
 0x598   :  { %v2949_v44 = vpop.f32.mrb[58].mxu1  ;;  %3270 = vmatpush3.bf16.msra.mxu0 %v3269_v43  ;;  %v3346_v43 = vpack.c.bf16 %v2043_v42, %v2042_v39 }
 0x599   :  { %v1690_v45 = vadd.f32 %v2949_v44, %v4297_v15  ;;  %v1684_v47 = vpop.f32.mrb[59].mxu1  ;;  %3271 = vmatprep.subr.bf16.mxu0 %v3650_v8  ;;  %v2044_v44 = vld [vmem:[#allocation14 + $0x40] sm:$0xff] }
 0x59a   :  { %v1685_v2 = vadd.f32 %v4297_v15, %v1684_v47 }
 0x59b   :  { %v1724_v41 = vmax.f32 %v1690_v45, 0.0  ;;  %v2045_v45 = vld [vmem:[#allocation14 + $0x48] sm:$0xff] }
 0x59c   :  { %v1723_v48 = vmax.f32 %v1685_v2, 0.0  ;;  %v3349_v47 = vpack.c.bf16 %v2045_v45, %v2044_v44  ;;  %v2046_v2 = vld [vmem:[#allocation14 + $0x50] sm:$0xff] }
 0x59d   :  { %1740 = vst [vmem:[#allocation18 + $0x58] sm:$0xff] %v1724_v41 }
 0x59e   :  { %1739 = vst [vmem:[#allocation18 + $0x50] sm:$0xff] %v1723_v48  ;;  %v3272_v49 = vpack.c.bf16 %v1724_v41, %v1723_v48  ;;  %v2047_v41 = vld [vmem:[#allocation14 + $0x58] sm:$0xff] }
 0x59f   :  { %v3352_v48 = vpack.c.bf16 %v2047_v41, %v2046_v2 }
 0x5a0   :  { %v2952_v50 = vpop.f32.mrb[60].mxu1  ;;  %3273 = vmatpush3.bf16.msra.mxu0 %v3272_v49  ;;  %v2048_v49 = vld [vmem:[#allocation14 + $0x60] sm:$0xff] }
 0x5a1   :  { %v1700_v5 = vadd.f32 %v2952_v50, %v4297_v15  ;;  %v1694_v51 = vpop.f32.mrb[61].mxu1  ;;  %3274 = vmatprep.subr.bf16.mxu0 %v3650_v8  ;;  %v2049_v50 = vld [vmem:[#allocation14 + $0x68] sm:$0xff] }
 0x5a2   :  { %v1695_v52 = vadd.f32 %v4297_v15, %v1694_v51 }
 0x5a3   :  { %v1726_v53 = vmax.f32 %v1700_v5, 0.0  ;;  %v3355_v5 = vpack.c.bf16 %v2049_v50, %v2048_v49 }
 0x5a4   :  { %v1725_v54 = vmax.f32 %v1695_v52, 0.0  ;;  %v2331_v52 = vld [vmem:[%s4408_s14] ss:$0 sm:$0xff] }
 0x5a5   :  { %1742 = vst [vmem:[#allocation18 + $0x68] sm:$0xff] %v1726_v53 }
 0x5a6   :  { %1741 = vst [vmem:[#allocation18 + $0x60] sm:$0xff] %v1725_v54  ;;  %v3275_v55 = vpack.c.bf16 %v1726_v53, %v1725_v54 }
 0x5a8   :  { %v2955_v56 = vpop.f32.mrb[62].mxu1  ;;  %3276 = vmatpush3.bf16.msra.mxu0 %v3275_v55 }
 0x5a9   :  { %v1710_v4 = vadd.f32 %v2955_v56, %v4297_v15  ;;  %v1704_v58 = vpop.f32.mrb[63].mxu1  ;;  %3277 = vmatprep.subr.bf16.mxu0 %v3650_v8 }
 0x5aa   :  { %v1705_v59 = vadd.f32 %v4297_v15, %v1704_v58  ;;  %v1943_v15 = vld [vmem:[#allocation12 + $0x8] sm:$0xff]  ;;  %v2051_v58 = vld [vmem:[#allocation14 + $0x78] sm:$0xff] }
 0x5ab   :  { %v1728_v60 = vmax.f32 %v1710_v4, 0.0  ;;  %v3313_v40 = vpack.c.bf16 %v1943_v15, %v1942_v14  ;;  %v2050_v4 = vld [vmem:[#allocation14 + $0x70] sm:$0xff]  ;;  %v2134_v14 = vld [vmem:[#allocation15 + $0x20] sm:$0xff]  ;;  %v2135_v15 = vld [vmem:[#allocation15 + $0x28] sm:$0xff] }
 0x5ac   :  { %v1727_v61 = vmax.f32 %v1705_v59, 0.0  ;;  %v3358_v59 = vpack.c.bf16 %v2051_v58, %v2050_v4  ;;  %v3367_v16 = vpack.c.bf16 %v2135_v15, %v2134_v14 }
 0x5ad   :  { %1744 = vst [vmem:[#allocation18 + $0x78] sm:$0xff] %v1728_v60 }
 0x5ae   :  { %1743 = vst [vmem:[#allocation18 + $0x70] sm:$0xff] %v1727_v61  ;;  %v3278_v12 = vpack.c.bf16 %v1728_v60, %v1727_v61  ;;  %v2130_v60 = vld [vmem:[#allocation15] sm:$0xff]  ;;  %v2131_v61 = vld [vmem:[#allocation15 + $0x8] sm:$0xff] }
 0x5af   :  { %v3361_v57 = vpack.c.bf16 %v2131_v61, %v2130_v60 }
 0x5b0   :  { %3279 = vmatpush3.bf16.msra.mxu0 %v3278_v12  ;;  %v2133_v12 = vld [vmem:[#allocation15 + $0x18] sm:$0xff] }
 0x5b1   :  { %3312 = vmatprep.subr.bf16.mxu0 %v3650_v8 }
 0x5b3   :  { %2989 = vmatmul.mubr.msk.f32.vlgmr.msra.gmra.mrb[64].mxu0 %vm1752_vm3, %v3652_v13  ;;  %v3364_v13 = vpack.c.bf16 %v2133_v12, %v2132_v7 }
 0x5b4   :  { %3023 = vmatprep.mubr.msk.f32.mxu0 %vm3651_vm0, %v3649_v46  ;;  %3314 = vmatpush3.bf16.msra.mxu0 %v3313_v40  ;;  %v2137_v40 = vld [vmem:[#allocation15 + $0x38] sm:$0xff] }
 0x5b5   :  { %3315 = vmatprep.subr.bf16.mxu0 %v3650_v8 }
 0x5b8   :  { %3317 = vmatpush3.bf16.msra.mxu0 %v3316_v17  ;;  %v2138_v17 = vld [vmem:[#allocation15 + $0x40] sm:$0xff] }
 0x5b9   :  { %3318 = vmatprep.subr.bf16.mxu0 %v3650_v8  ;;  %v3373_v18 = vpack.c.bf16 %v2139_v63, %v2138_v17 }
 0x5bc   :  { %3320 = vmatpush3.bf16.msra.mxu0 %v3319_v19  ;;  %v2140_v19 = vld [vmem:[#allocation15 + $0x50] sm:$0xff] }
 0x5bd   :  { %3321 = vmatprep.subr.bf16.mxu0 %v3650_v8  ;;  %v3376_v20 = vpack.c.bf16 %v2141_v9, %v2140_v19 }
 0x5c0   :  { %3323 = vmatpush3.bf16.msra.mxu0 %v3322_v21  ;;  %v2142_v21 = vld [vmem:[#allocation15 + $0x60] sm:$0xff] }
 0x5c1   :  { %3324 = vmatprep.subr.bf16.mxu0 %v3650_v8  ;;  %v3379_v23 = vpack.c.bf16 %v2143_v22, %v2142_v21 }
 0x5c4   :  { %3326 = vmatpush3.bf16.msra.mxu0 %v3325_v62  ;;  %v2332_v62 = vld [vmem:[%s4410_s16] ss:$0 sm:$0xff]  ;;  %s2240_s16 = sshll.u32 %s3653_s15, 4  ;;  %s2241_s16 = int_to_ptr.vmem [resolvable:$true] %s2240_s16 }
 0x5c5   :  { %3327 = vmatprep.subr.bf16.mxu0 %v3650_v8  ;;  %s3580_s1 = scalar_lea.vmem %s2241_s16, 2048  ;;  %p3585_p9 = scmp.lt.s32.totalorder %s2241_s16, %s2241_s16 }
 0x5c6   :  { %p3581_p8 = scmp.ne.s32.totalorder %s2241_s16, %s3580_s1  ;;  %p3586_p10 = scmp.lt.s32.totalorder %s3580_s1, %s3580_s1 }
 0x5c8   :  { %3329 = vmatpush3.bf16.msra.mxu0 %v3328_v26  ;;  %p3587_p11 = por %p3586_p10, %p3585_p9 }
 0x5c9   :  { %3330 = vmatprep.subr.bf16.mxu0 %v3650_v8 }
 0x5ca   :  { %p3588_p12 = pnand %p3587_p11, %p3581_p8 }
 0x5cc   :  { %3332 = vmatpush3.bf16.msra.mxu0 %v3331_v29  ;;  %v2333_v29 = vld [vmem:[%s4412_s18] ss:$0 sm:$0xff] }
 0x5cd   :  { %3333 = vmatprep.subr.bf16.mxu0 %v3650_v8 }
 0x5d0   :  { %3335 = vmatpush3.bf16.msra.mxu0 %v3334_v30 }
 0x5d1   :  { %3360 = vmatprep.subr.bf16.mxu0 %v3650_v8 }
 0x686   :  { %v1822_v27 = vpop.f32.mrb[64].mxu0 }
 0x687   :  { %v2990_v1 = vpop.f32.mrb[65].mxu0  ;;  %1936 = vmatmul.mubr.f32.vlgmr.msra.gmra.mrb[64].mxu1 %v1822_v27 }
 0x688   :  { %3058 = vmatprep.mubr.msk.f32.mxu1 %vm3651_vm0, %v3649_v46  ;;  %3338 = vmatpush3.bf16.msra.mxu1 %v3337_v0  ;;  %v2144_v1 = vld [vmem:[#allocation15 + $0x70] sm:$0xff] }
 0x689   :  { %3339 = vmatprep.subr.bf16.mxu1 %v3650_v8  ;;  %v3382_v28 = vpack.c.bf16 %v2145_v11, %v2144_v1 }
 0x68c   :  { %3341 = vmatpush3.bf16.msra.mxu1 %v3340_v36 }
 0x68d   :  { %3342 = vmatprep.subr.bf16.mxu1 %v3650_v8 }
 0x690   :  { %3344 = vmatpush3.bf16.msra.mxu1 %v3343_v3 }
 0x691   :  { %3345 = vmatprep.subr.bf16.mxu1 %v3650_v8 }
 0x694   :  { %3347 = vmatpush3.bf16.msra.mxu1 %v3346_v43 }
 0x695   :  { %3348 = vmatprep.subr.bf16.mxu1 %v3650_v8 }
 0x698   :  { %3350 = vmatpush3.bf16.msra.mxu1 %v3349_v47 }
 0x699   :  { %3351 = vmatprep.subr.bf16.mxu1 %v3650_v8 }
 0x69c   :  { %3353 = vmatpush3.bf16.msra.mxu1 %v3352_v48 }
 0x69d   :  { %3354 = vmatprep.subr.bf16.mxu1 %v3650_v8 }
 0x6a0   :  { %3356 = vmatpush3.bf16.msra.mxu1 %v3355_v5 }
 0x6a1   :  { %3357 = vmatprep.subr.bf16.mxu1 %v3650_v8 }
 0x6a4   :  { %3359 = vmatpush3.bf16.msra.mxu1 %v3358_v59 }
 0x75a   :  { %v2626_v51 = vpop.f32.mrb[64].mxu1 }
 0x75b   :  { %v2627_v53 = vpop.f32.mrb[65].mxu1 }
 0x75c   :  { %v2628_v54 = vadd.f32 %v2627_v53, %v2626_v51 }
 0x75e   :  { %v1938_v55 = vadd.f32 %v2628_v54, %v2331_v52 }
 0x760   :  { %v1941_v56 = vmax.f32 %v1938_v55, 0.0 }
 0x762   :  { %3024 = vmatmul.mubr.f32.vlgmr.msra.gmra.mrb[66].mxu0 %v1941_v56 }
 0x763   :  { %3093 = vmatprep.mubr.msk.f32.mxu0 %vm3651_vm0, %v3649_v46  ;;  %3362 = vmatpush3.bf16.msra.mxu0 %v3361_v57  ;;  %v2136_v46 = vld [vmem:[#allocation15 + $0x30] sm:$0xff] }
 0x764   :  { %3363 = vmatprep.subr.bf16.mxu0 %v3650_v8  ;;  %v3370_v6 = vpack.c.bf16 %v2137_v40, %v2136_v46 }
 0x767   :  { %3365 = vmatpush3.bf16.msra.mxu0 %v3364_v13 }
 0x768   :  { %3366 = vmatprep.subr.bf16.mxu0 %v3650_v8 }
 0x76b   :  { %3368 = vmatpush3.bf16.msra.mxu0 %v3367_v16 }
 0x76c   :  { %3369 = vmatprep.subr.bf16.mxu0 %v3650_v8 }
 0x76f   :  { %3371 = vmatpush3.bf16.msra.mxu0 %v3370_v6 }
 0x770   :  { %3372 = vmatprep.subr.bf16.mxu0 %v3650_v8 }
 0x773   :  { %3374 = vmatpush3.bf16.msra.mxu0 %v3373_v18 }
 0x774   :  { %3375 = vmatprep.subr.bf16.mxu0 %v3650_v8 }
 0x777   :  { %3377 = vmatpush3.bf16.msra.mxu0 %v3376_v20 }
 0x778   :  { %3378 = vmatprep.subr.bf16.mxu0 %v3650_v8 }
 0x77b   :  { %3380 = vmatpush3.bf16.msra.mxu0 %v3379_v23 }
 0x77c   :  { %3381 = vmatprep.subr.bf16.mxu0 %v3650_v8 }
 0x77f   :  { %3383 = vmatpush3.bf16.msra.mxu0 %v3382_v28 }
 0x835   :  { %v2031_v24 = vpop.f32.mrb[66].mxu0 }
 0x836   :  { %v2032_v25 = vadd.f32 %v2332_v62, %v2031_v24  ;;  %v3025_v26 = vpop.f32.mrb[67].mxu0 }
 0x838   :  { %v2035_v27 = vmax.f32 %v2032_v25, 0.0 }
 0x83a   :  { %3059 = vmatmul.mubr.f32.vlgmr.msra.gmra.mrb[66].mxu1 %v2035_v27 }
 0x90d   :  { %v2125_v35 = vpop.f32.mrb[66].mxu1 }
 0x90e   :  { %v2126_v10 = vadd.f32 %v2333_v29, %v2125_v35  ;;  %v3060_v8 = vpop.f32.mrb[67].mxu1 }
 0x910   :  { %v2129_v30 = vmax.f32 %v2126_v10, 0.0 }
 0x912   :  { %3094 = vmatmul.mubr.f32.vlgmr.msra.gmra.mrb[68].mxu0 %v2129_v30 }
 0x913   :  { %3591 = shalt.err (!%p3588_p12)
}
 0x914   :  { %s3592_s5 = scalar_lea.hbm %s4416_s22, 2048 }
 0x915   :  { %p3593_p13 = scmp.ne.s32.totalorder %s4416_s22, %s3592_s5  ;;  %p3596_p0 = scmp.lt.u32.totalorder %s3592_s5, %s4416_s22 }
 0x917   :  { %p3598_p1 = pnand %p3596_p0, %p3593_p13 }
 0x919   :  { %3601 = shalt.err (!%p3598_p1)
}
 0x91a   :  { %2246 = dma.vmem_to_hbm [thread:$0]  %s2241_s16, 2048, %s4416_s22, [#allocation19], %s3640_s2, %s3640_s2, %s3641_s27  }
 0x91b   :  { %v2334_v31 = vld [vmem:[%s4414_s20] ss:$0 sm:$0xff]  ;;  %s3654_s8 = smov [#allocation17]  }
 0x91c   :  { %s2231_s29 = sshll.u32 %s3654_s8, 4  ;;  %s2232_s29 = int_to_ptr.vmem [resolvable:$true] %s2231_s29 }
 0x91d   :  { %s3602_s10 = scalar_lea.vmem %s2232_s29, 128  ;;  %p3607_p3 = scmp.lt.s32.totalorder %s2232_s29, %s2232_s29 }
 0x91e   :  { %p3603_p2 = scmp.ne.s32.totalorder %s2232_s29, %s3602_s10  ;;  %p3608_p4 = scmp.lt.s32.totalorder %s3602_s10, %s3602_s10 }
 0x920   :  { %p3609_p5 = por %p3608_p4, %p3607_p3 }
 0x922   :  { %p3610_p6 = pnand %p3609_p5, %p3603_p2 }
 0x9e5   :  { %v2219_v32 = vpop.f32.mrb[68].mxu0 }
 0x9e6   :  { %v2220_v33 = vadd.f32 %v2334_v31, %v2219_v32  ;;  %v3095_v0 = vpop.f32.mrb[69].mxu0 }
 0x9e8   :  { %v2223_v34 = vmax.f32 %v2220_v33, 0.0 }
 0x9ea   :  { %2224 = vst [vmem:[#allocation17] sm:$0xff] %v2223_v34 }
 0x9eb   :  { %3613 = shalt.err (!%p3610_p6)
}
 0x9ec   :  { %s4438_s27 = sld [smem:[#allocation34_spill]] }
 0x9f2   :  { %s3614_s30 = scalar_lea.hbm %s4438_s27, 128 }
 0x9f3   :  { %p3615_p7 = scmp.ne.s32.totalorder %s4438_s27, %s3614_s30  ;;  %p3618_p8 = scmp.lt.u32.totalorder %s3614_s30, %s4438_s27 }
 0x9f5   :  { %p3620_p9 = pnand %p3618_p8, %p3615_p7 }
 0x9f7   :  { %3623 = shalt.err (!%p3620_p9)
}
 0x9f8   :  { %2234 = dma.vmem_to_hbm [thread:$0]  %s2232_s29, 128, %s4438_s27, [#allocation5]  }
 0x9f9   :  { %3634 = dma.done.wait [#allocation5], 128  }
 0x9fa   :  { %3635 = vsyncadd [#allocation5], 4294967168 }
 0x9fb   :  { %3636 = dma.done.wait [#allocation19], 2048  }
 0x9fc   :  { %3637 = vsyncadd [#allocation19], 4294965248 }
 0x9fd   :  { %2253 = vsyncpa [#allocation4], 1 }
 0x9fe   :  { %2254 = vsyncpa [#allocation7], 1 }
 0x9ff   :  { %2255 = vsyncpa [#allocation10], 1 }
 0xa00   :  { %2256 = vsyncpa [#allocation13], 1 }
 0xa01   :  { %2257 = vsyncpa [#allocation16], 1 }
 0xa02   :  { %2258 = vsyncpa [#allocation5], 1 }
 0xa03   :  { %2259 = vsyncpa [#allocation19], 1 }

</bundles_post_ra>
